<compile_context>
chip_gen: v5e
topology: v5e:2x2
jax: 0.10.0
libtpu: 0.0.40
codegen_flags: <defaults>
</compile_context>

<pallas_src>
import functools

import numpy as np
import jax
import jax.numpy as jnp
from jax.experimental import pallas as pl
from jax.experimental.pallas import tpu as pltpu

# ----------------------------- model hyper-params ---------------------------
SEQ = 8          # sequence length  (S)
BATCH = 2        # batch size       (B)
D_MODEL = 32     # model width      (D)
N_HEAD = 4       # attention heads
DIM_FF = 64      # feed-forward width
NUM_LAYERS = 2
EPS = 1e-5       # LayerNorm eps (PyTorch default)


# ----------------------------- fused Pallas kernel --------------------------
def _encoder_kernel(x_ref, wqkv_ref, bqkv_ref, wo_ref, bo_ref,
                    w1_ref, b1_ref, w2_ref, b2_ref,
                    ln1g_ref, ln1b_ref, ln2g_ref, ln2b_ref,
                    out_ref, attnw_ref, *, num_layers, num_heads):
    """Whole TransformerEncoder forward (all layers) for the full batch.

    x_ref:     (B, S, D) activations.
    weights:   (in, out) layout; biases (1, out).
    out_ref:   (B, S, D) final activations.
    attnw_ref: (L, B, S, S) head-averaged attention weights per layer
               (nn.MultiheadAttention need_weights=True, average_attn_weights=True).
    """
    b, s, d = x_ref.shape
    dh = d // num_heads
    scale = 1.0 / float(np.sqrt(dh))

    # Flatten batch into the matmul M dimension (tile-aligned: S == 8).
    x2d = x_ref[...].reshape(b * s, d)            # (B*S, D)

    wqkv = wqkv_ref[...]; bqkv = bqkv_ref[...]
    wo = wo_ref[...];     bo = bo_ref[...]
    w1 = w1_ref[...];     b1 = b1_ref[...]
    w2 = w2_ref[...];     b2 = b2_ref[...]
    g1 = ln1g_ref[...];   be1 = ln1b_ref[...]
    g2 = ln2g_ref[...];   be2 = ln2b_ref[...]

    def layer_norm(z, gamma, beta):
        mu = jnp.mean(z, axis=-1, keepdims=True)
        c = z - mu
        var = jnp.mean(c * c, axis=-1, keepdims=True)
        return c * jax.lax.rsqrt(var + EPS) * gamma + beta

    for layer in range(num_layers):               # deepcopy clones share params
        # ---- fused QKV projection: one (B*S, D) @ (D, 3D) matmul ------------
        qkv = jnp.dot(x2d, wqkv, preferred_element_type=jnp.float32) + bqkv
        qkv3 = qkv.reshape(b, s, 3 * d)           # (B, S, 3D), S == sublane tile

        o_acc = jnp.zeros((b * s, d), jnp.float32)
        w_sum = jnp.zeros((b, s, s), jnp.float32)
        for h in range(num_heads):                # static unroll; batch dim batched
            qh = qkv3[:, :, h * dh:(h + 1) * dh] * scale          # (B, S, dh)
            kh = qkv3[:, :, d + h * dh: d + (h + 1) * dh]
            vh = qkv3[:, :, 2 * d + h * dh: 2 * d + (h + 1) * dh]
            sc = jnp.einsum('bqc,bkc->bqk', qh, kh,
                            preferred_element_type=jnp.float32)   # (B, S, S)
            sc = sc - jnp.max(sc, axis=-1, keepdims=True)
            e = jnp.exp(sc)
            p = e / jnp.sum(e, axis=-1, keepdims=True)  # exact div (1e-4 tolerance)
            w_sum = w_sum + p
            oh = jnp.einsum('bqk,bkc->bqc', p, vh,
                            preferred_element_type=jnp.float32)   # (B, S, dh)
            # Fold head output straight into the output projection (no concat):
            o_acc = o_acc + jnp.dot(oh.reshape(b * s, dh),
                                    wo[h * dh:(h + 1) * dh, :],
                                    preferred_element_type=jnp.float32)
        attnw_ref[layer] = w_sum * (1.0 / num_heads)

        # ---- add & LayerNorm 1 ----
        x2d = layer_norm(x2d + o_acc + bo, g1, be1)
        # ---- feed-forward ----
        hid = jnp.maximum(jnp.dot(x2d, w1, preferred_element_type=jnp.float32) + b1, 0.0)
        ff = jnp.dot(hid, w2, preferred_element_type=jnp.float32) + b2
        # ---- add & LayerNorm 2 ----
        x2d = layer_norm(x2d + ff, g2, be2)

    out_ref[...] = x2d.reshape(b, s, d)


def _encoder_call(x_bsd, p, num_layers):
    """Single fused pallas_call: no grid, every operand fully VMEM-resident
    (weights + activations total < 50 KB, far under any generation's VMEM)."""
    b, s, d = x_bsd.shape
    kernel = functools.partial(_encoder_kernel, num_layers=num_layers,
                               num_heads=N_HEAD)
    return pl.pallas_call(
        kernel,
        out_shape=(jax.ShapeDtypeStruct((b, s, d), jnp.float32),
                   jax.ShapeDtypeStruct((num_layers, b, s, s), jnp.float32)),
        compiler_params=pltpu.CompilerParams(vmem_limit_bytes=32 * 1024 * 1024),
    )(x_bsd, p["wqkv"], p["bqkv"], p["wo"], p["bo"],
      p["w1"], p["b1"], p["w2"], p["b2"],
      p["ln1_g"], p["ln1_b"], p["ln2_g"], p["ln2_b"])


# ----------------------------- encoder forward -------------------------------
def transformer_encoder_forward(src, layer_params, num_layers=NUM_LAYERS):
    """src: (S, B, D) seq-first (PyTorch nn.Transformer convention).

    Returns (output (S, B, D), [per-layer attn weights (B, S, S)]).
    All layers use the same parameters (deepcopy semantics of _get_clones).
    """
    x = jnp.transpose(src, (1, 0, 2))          # -> (B, S, D), 2 KB boundary op
    out_bsd, attnw = _encoder_call(x, layer_params, num_layers)
    out = jnp.transpose(out_bsd, (1, 0, 2))    # -> (S, B, D)
    weights = [attnw[l] for l in range(num_layers)]
    # norm=None (default TransformerEncoder constructor)
    return out, weights


# ----------------------------- parameter init --------------------------------
def init_layer_params(key):
    def u(k, shape, bound):
        return jax.random.uniform(k, shape, jnp.float32, -bound, bound)

    ks = jax.random.split(key, 6)
    d, f = D_MODEL, DIM_FF
    xav = float(np.sqrt(6.0 / (d + d)))
    return {
        # attention: fused QKV weight (in, 3*out) and bias, output proj (in, out)
        "wqkv": u(ks[0], (d, 3 * d), xav),
        "bqkv": jnp.zeros((1, 3 * d), jnp.float32),
        "wo": u(ks[1], (d, d), 1.0 / np.sqrt(d)),
        "bo": jnp.zeros((1, d), jnp.float32),
        # feed-forward
        "w1": u(ks[2], (d, f), 1.0 / np.sqrt(d)), "b1": u(ks[3], (1, f), 1.0 / np.sqrt(d)),
        "w2": u(ks[4], (f, d), 1.0 / np.sqrt(f)), "b2": u(ks[5], (1, d), 1.0 / np.sqrt(f)),
        # layer norms
        "ln1_g": jnp.ones((1, d), jnp.float32), "ln1_b": jnp.zeros((1, d), jnp.float32),
        "ln2_g": jnp.ones((1, d), jnp.float32), "ln2_b": jnp.zeros((1, d), jnp.float32),
    }


# ----------------------------- pure-JAX reference ----------------------------
def reference_forward(src, p, num_layers=NUM_LAYERS):
    x = jnp.transpose(src, (1, 0, 2))
    d = D_MODEL
    dh = d // N_HEAD
    wq, wk, wv = p["wqkv"][:, :d], p["wqkv"][:, d:2 * d], p["wqkv"][:, 2 * d:]
    bq, bk, bv = p["bqkv"][:, :d], p["bqkv"][:, d:2 * d], p["bqkv"][:, 2 * d:]
    weights = []
    for _ in range(num_layers):
        q = x @ wq + bq
        k = x @ wk + bk
        v = x @ wv + bv
        outs, ws = [], []
        for h in range(N_HEAD):
            sl = slice(h * dh, (h + 1) * dh)
            s = (q[..., sl] / np.sqrt(dh)) @ jnp.swapaxes(k[..., sl], -1, -2)
            pw = jax.nn.softmax(s, axis=-1)
            ws.append(pw)
            outs.append(pw @ v[..., sl])
        attn = jnp.concatenate(outs, axis=-1) @ p["wo"] + p["bo"]
        w_avg = sum(ws) / N_HEAD
        z = x + attn
        mu = z.mean(-1, keepdims=True)
        var = ((z - mu) ** 2).mean(-1, keepdims=True)
        x = (z - mu) * jax.lax.rsqrt(var + EPS) * p["ln1_g"] + p["ln1_b"]
        ff = jnp.maximum(x @ p["w1"] + p["b1"], 0.0) @ p["w2"] + p["b2"]
        z = x + ff
        mu = z.mean(-1, keepdims=True)
        var = ((z - mu) ** 2).mean(-1, keepdims=True)
        x = (z - mu) * jax.lax.rsqrt(var + EPS) * p["ln2_g"] + p["ln2_b"]
        weights.append(w_avg)
    return jnp.transpose(x, (1, 0, 2)), weights


# ----------------------------- main ------------------------------------------
if __name__ == "__main__":
    key = jax.random.PRNGKey(0)
    k_src, k_par = jax.random.split(key)
    src = jax.random.normal(k_src, (SEQ, BATCH, D_MODEL), jnp.float32)
    params = init_layer_params(k_par)   # shared by all layers (deepcopy semantics)

    fwd = jax.jit(transformer_encoder_forward)
    out, weights = fwd(src, params)
    out = jax.block_until_ready(out)
    weights = [jax.block_until_ready(w) for w in weights]

    ref_out, ref_w = reference_forward(src, params)
    assert out.shape == (SEQ, BATCH, D_MODEL)
    assert len(weights) == NUM_LAYERS and weights[0].shape == (BATCH, SEQ, SEQ)
    np.testing.assert_allclose(np.asarray(out), np.asarray(ref_out), rtol=1e-4, atol=1e-4)
    for w, rw in zip(weights, ref_w):
        np.testing.assert_allclose(np.asarray(w), np.asarray(rw), rtol=1e-4, atol=1e-4)

    print("KERNEL_OK")
</pallas_src>

<mosaic_0001>
module attributes {stable_mosaic.version = 11 : i64} {
  func.func @_encoder_kernel(%arg0: memref<2x8x32xf32, #tpu.memory_space<vmem>>, %arg1: memref<32x96xf32, #tpu.memory_space<vmem>>, %arg2: memref<1x96xf32, #tpu.memory_space<vmem>>, %arg3: memref<32x32xf32, #tpu.memory_space<vmem>>, %arg4: memref<1x32xf32, #tpu.memory_space<vmem>>, %arg5: memref<32x64xf32, #tpu.memory_space<vmem>>, %arg6: memref<1x64xf32, #tpu.memory_space<vmem>>, %arg7: memref<64x32xf32, #tpu.memory_space<vmem>>, %arg8: memref<1x32xf32, #tpu.memory_space<vmem>>, %arg9: memref<1x32xf32, #tpu.memory_space<vmem>>, %arg10: memref<1x32xf32, #tpu.memory_space<vmem>>, %arg11: memref<1x32xf32, #tpu.memory_space<vmem>>, %arg12: memref<1x32xf32, #tpu.memory_space<vmem>>, %arg13: memref<2x8x32xf32, #tpu.memory_space<vmem>>, %arg14: memref<2x2x8x8xf32, #tpu.memory_space<vmem>>) attributes {dimension_semantics = [], scalar_prefetch = 0 : i64, scratch_operands = 0 : i64, tpu.core_type = #tpu.core_type<tc>} {
    %c0 = arith.constant 0 : index
    %c0_0 = arith.constant 0 : index
    %c0_1 = arith.constant 0 : index
    %0 = vector.load %arg0[%c0, %c0_0, %c0_1] : memref<2x8x32xf32, #tpu.memory_space<vmem>>, vector<2x8x32xf32>
    %1 = vector.shape_cast %0 : vector<2x8x32xf32> to vector<16x32xf32>
    %c0_2 = arith.constant 0 : index
    %c0_3 = arith.constant 0 : index
    %2 = vector.load %arg1[%c0_2, %c0_3] : memref<32x96xf32, #tpu.memory_space<vmem>>, vector<32x96xf32>
    %c0_4 = arith.constant 0 : index
    %c0_5 = arith.constant 0 : index
    %3 = vector.load %arg2[%c0_4, %c0_5] : memref<1x96xf32, #tpu.memory_space<vmem>>, vector<1x96xf32>
    %c0_6 = arith.constant 0 : index
    %c0_7 = arith.constant 0 : index
    %4 = vector.load %arg3[%c0_6, %c0_7] : memref<32x32xf32, #tpu.memory_space<vmem>>, vector<32x32xf32>
    %c0_8 = arith.constant 0 : index
    %c0_9 = arith.constant 0 : index
    %5 = vector.load %arg4[%c0_8, %c0_9] : memref<1x32xf32, #tpu.memory_space<vmem>>, vector<1x32xf32>
    %c0_10 = arith.constant 0 : index
    %c0_11 = arith.constant 0 : index
    %6 = vector.load %arg5[%c0_10, %c0_11] : memref<32x64xf32, #tpu.memory_space<vmem>>, vector<32x64xf32>
    %c0_12 = arith.constant 0 : index
    %c0_13 = arith.constant 0 : index
    %7 = vector.load %arg6[%c0_12, %c0_13] : memref<1x64xf32, #tpu.memory_space<vmem>>, vector<1x64xf32>
    %c0_14 = arith.constant 0 : index
    %c0_15 = arith.constant 0 : index
    %8 = vector.load %arg7[%c0_14, %c0_15] : memref<64x32xf32, #tpu.memory_space<vmem>>, vector<64x32xf32>
    %c0_16 = arith.constant 0 : index
    %c0_17 = arith.constant 0 : index
    %9 = vector.load %arg8[%c0_16, %c0_17] : memref<1x32xf32, #tpu.memory_space<vmem>>, vector<1x32xf32>
    %c0_18 = arith.constant 0 : index
    %c0_19 = arith.constant 0 : index
    %10 = vector.load %arg9[%c0_18, %c0_19] : memref<1x32xf32, #tpu.memory_space<vmem>>, vector<1x32xf32>
    %c0_20 = arith.constant 0 : index
    %c0_21 = arith.constant 0 : index
    %11 = vector.load %arg10[%c0_20, %c0_21] : memref<1x32xf32, #tpu.memory_space<vmem>>, vector<1x32xf32>
    %c0_22 = arith.constant 0 : index
    %c0_23 = arith.constant 0 : index
    %12 = vector.load %arg11[%c0_22, %c0_23] : memref<1x32xf32, #tpu.memory_space<vmem>>, vector<1x32xf32>
    %c0_24 = arith.constant 0 : index
    %c0_25 = arith.constant 0 : index
    %13 = vector.load %arg12[%c0_24, %c0_25] : memref<1x32xf32, #tpu.memory_space<vmem>>, vector<1x32xf32>
    %cst = arith.constant dense<0.000000e+00> : vector<16x96xf32>
    %14 = tpu.matmul %1, %2, %cst {dimension_numbers = #tpu.dot_dimension_numbers<[1], [0], [0], [1], [0, 0, 1, 1], [], []>} : vector<16x32xf32>, vector<32x96xf32>, vector<16x96xf32> -> vector<16x96xf32>
    %15 = vector.broadcast %3 : vector<1x96xf32> to vector<16x96xf32>
    %16 = arith.addf %14, %15 : vector<16x96xf32>
    %17 = vector.shape_cast %16 : vector<16x96xf32> to vector<2x8x96xf32>
    %cst_26 = arith.constant 0.000000e+00 : f32
    %18 = vector.broadcast %cst_26 : f32 to vector<16x32xf32>
    %cst_27 = arith.constant 0.000000e+00 : f32
    %19 = vector.broadcast %cst_27 : f32 to vector<2x8x8xf32>
    %20 = vector.extract_strided_slice %17 {offsets = [0, 0, 0], sizes = [2, 8, 8], strides = [1, 1, 1]} : vector<2x8x96xf32> to vector<2x8x8xf32>
    %cst_28 = arith.constant 0.353553385 : f32
    %21 = vector.broadcast %cst_28 : f32 to vector<2x8x8xf32>
    %22 = arith.mulf %20, %21 : vector<2x8x8xf32>
    %23 = vector.extract_strided_slice %17 {offsets = [0, 0, 32], sizes = [2, 8, 8], strides = [1, 1, 1]} : vector<2x8x96xf32> to vector<2x8x8xf32>
    %24 = vector.extract_strided_slice %17 {offsets = [0, 0, 64], sizes = [2, 8, 8], strides = [1, 1, 1]} : vector<2x8x96xf32> to vector<2x8x8xf32>
    "tpu.trace_start"() <{level = 10 : i32, message = "bqc,bkc->bqk"}> : () -> ()
    %cst_29 = arith.constant dense<0.000000e+00> : vector<2x8x8xf32>
    %25 = tpu.matmul %22, %23, %cst_29 {dimension_numbers = #tpu.dot_dimension_numbers<[2], [2], [1], [1], [0, 0, 0, 1, 1, 1], [0], [0]>} : vector<2x8x8xf32>, vector<2x8x8xf32>, vector<2x8x8xf32> -> vector<2x8x8xf32>
    "tpu.trace_stop"() : () -> ()
    %cst_30 = arith.constant dense<0xFF800000> : vector<2x8xf32>
    %26 = vector.multi_reduction <maximumf>, %25, %cst_30 [2] : vector<2x8x8xf32> to vector<2x8xf32>
    %27 = vector.shape_cast %26 : vector<2x8xf32> to vector<2x8x1xf32>
    %28 = vector.broadcast %27 : vector<2x8x1xf32> to vector<2x8x8xf32>
    %29 = arith.subf %25, %28 : vector<2x8x8xf32>
    %30 = math.exp %29 : vector<2x8x8xf32>
    %cst_31 = arith.constant dense<0.000000e+00> : vector<2x8xf32>
    %31 = vector.multi_reduction <add>, %30, %cst_31 [2] : vector<2x8x8xf32> to vector<2x8xf32>
    %32 = vector.shape_cast %31 : vector<2x8xf32> to vector<2x8x1xf32>
    %33 = vector.broadcast %32 : vector<2x8x1xf32> to vector<2x8x8xf32>
    %34 = arith.divf %30, %33 : vector<2x8x8xf32>
    %35 = arith.addf %19, %34 : vector<2x8x8xf32>
    "tpu.trace_start"() <{level = 10 : i32, message = "bqk,bkc->bqc"}> : () -> ()
    %cst_32 = arith.constant dense<0.000000e+00> : vector<2x8x8xf32>
    %36 = tpu.matmul %34, %24, %cst_32 {dimension_numbers = #tpu.dot_dimension_numbers<[2], [1], [1], [2], [0, 0, 0, 1, 1, 2], [0], [0]>} : vector<2x8x8xf32>, vector<2x8x8xf32>, vector<2x8x8xf32> -> vector<2x8x8xf32>
    "tpu.trace_stop"() : () -> ()
    %37 = vector.shape_cast %36 : vector<2x8x8xf32> to vector<16x8xf32>
    %38 = vector.extract_strided_slice %4 {offsets = [0, 0], sizes = [8, 32], strides = [1, 1]} : vector<32x32xf32> to vector<8x32xf32>
    %cst_33 = arith.constant dense<0.000000e+00> : vector<16x32xf32>
    %39 = tpu.matmul %37, %38, %cst_33 {dimension_numbers = #tpu.dot_dimension_numbers<[1], [0], [0], [1], [0, 0, 1, 1], [], []>} : vector<16x8xf32>, vector<8x32xf32>, vector<16x32xf32> -> vector<16x32xf32>
    %40 = arith.addf %18, %39 : vector<16x32xf32>
    %41 = vector.extract_strided_slice %17 {offsets = [0, 0, 8], sizes = [2, 8, 8], strides = [1, 1, 1]} : vector<2x8x96xf32> to vector<2x8x8xf32>
    %cst_34 = arith.constant 0.353553385 : f32
    %42 = vector.broadcast %cst_34 : f32 to vector<2x8x8xf32>
    %43 = arith.mulf %41, %42 : vector<2x8x8xf32>
    %44 = vector.extract_strided_slice %17 {offsets = [0, 0, 40], sizes = [2, 8, 8], strides = [1, 1, 1]} : vector<2x8x96xf32> to vector<2x8x8xf32>
    %45 = vector.extract_strided_slice %17 {offsets = [0, 0, 72], sizes = [2, 8, 8], strides = [1, 1, 1]} : vector<2x8x96xf32> to vector<2x8x8xf32>
    "tpu.trace_start"() <{level = 10 : i32, message = "bqc,bkc->bqk"}> : () -> ()
    %cst_35 = arith.constant dense<0.000000e+00> : vector<2x8x8xf32>
    %46 = tpu.matmul %43, %44, %cst_35 {dimension_numbers = #tpu.dot_dimension_numbers<[2], [2], [1], [1], [0, 0, 0, 1, 1, 1], [0], [0]>} : vector<2x8x8xf32>, vector<2x8x8xf32>, vector<2x8x8xf32> -> vector<2x8x8xf32>
    "tpu.trace_stop"() : () -> ()
    %cst_36 = arith.constant dense<0xFF800000> : vector<2x8xf32>
    %47 = vector.multi_reduction <maximumf>, %46, %cst_36 [2] : vector<2x8x8xf32> to vector<2x8xf32>
    %48 = vector.shape_cast %47 : vector<2x8xf32> to vector<2x8x1xf32>
    %49 = vector.broadcast %48 : vector<2x8x1xf32> to vector<2x8x8xf32>
    %50 = arith.subf %46, %49 : vector<2x8x8xf32>
    %51 = math.exp %50 : vector<2x8x8xf32>
    %cst_37 = arith.constant dense<0.000000e+00> : vector<2x8xf32>
    %52 = vector.multi_reduction <add>, %51, %cst_37 [2] : vector<2x8x8xf32> to vector<2x8xf32>
    %53 = vector.shape_cast %52 : vector<2x8xf32> to vector<2x8x1xf32>
    %54 = vector.broadcast %53 : vector<2x8x1xf32> to vector<2x8x8xf32>
    %55 = arith.divf %51, %54 : vector<2x8x8xf32>
    %56 = arith.addf %35, %55 : vector<2x8x8xf32>
    "tpu.trace_start"() <{level = 10 : i32, message = "bqk,bkc->bqc"}> : () -> ()
    %cst_38 = arith.constant dense<0.000000e+00> : vector<2x8x8xf32>
    %57 = tpu.matmul %55, %45, %cst_38 {dimension_numbers = #tpu.dot_dimension_numbers<[2], [1], [1], [2], [0, 0, 0, 1, 1, 2], [0], [0]>} : vector<2x8x8xf32>, vector<2x8x8xf32>, vector<2x8x8xf32> -> vector<2x8x8xf32>
    "tpu.trace_stop"() : () -> ()
    %58 = vector.shape_cast %57 : vector<2x8x8xf32> to vector<16x8xf32>
    %59 = vector.extract_strided_slice %4 {offsets = [8, 0], sizes = [8, 32], strides = [1, 1]} : vector<32x32xf32> to vector<8x32xf32>
    %cst_39 = arith.constant dense<0.000000e+00> : vector<16x32xf32>
    %60 = tpu.matmul %58, %59, %cst_39 {dimension_numbers = #tpu.dot_dimension_numbers<[1], [0], [0], [1], [0, 0, 1, 1], [], []>} : vector<16x8xf32>, vector<8x32xf32>, vector<16x32xf32> -> vector<16x32xf32>
    %61 = arith.addf %40, %60 : vector<16x32xf32>
    %62 = vector.extract_strided_slice %17 {offsets = [0, 0, 16], sizes = [2, 8, 8], strides = [1, 1, 1]} : vector<2x8x96xf32> to vector<2x8x8xf32>
    %cst_40 = arith.constant 0.353553385 : f32
    %63 = vector.broadcast %cst_40 : f32 to vector<2x8x8xf32>
    %64 = arith.mulf %62, %63 : vector<2x8x8xf32>
    %65 = vector.extract_strided_slice %17 {offsets = [0, 0, 48], sizes = [2, 8, 8], strides = [1, 1, 1]} : vector<2x8x96xf32> to vector<2x8x8xf32>
    %66 = vector.extract_strided_slice %17 {offsets = [0, 0, 80], sizes = [2, 8, 8], strides = [1, 1, 1]} : vector<2x8x96xf32> to vector<2x8x8xf32>
    "tpu.trace_start"() <{level = 10 : i32, message = "bqc,bkc->bqk"}> : () -> ()
    %cst_41 = arith.constant dense<0.000000e+00> : vector<2x8x8xf32>
    %67 = tpu.matmul %64, %65, %cst_41 {dimension_numbers = #tpu.dot_dimension_numbers<[2], [2], [1], [1], [0, 0, 0, 1, 1, 1], [0], [0]>} : vector<2x8x8xf32>, vector<2x8x8xf32>, vector<2x8x8xf32> -> vector<2x8x8xf32>
    "tpu.trace_stop"() : () -> ()
    %cst_42 = arith.constant dense<0xFF800000> : vector<2x8xf32>
    %68 = vector.multi_reduction <maximumf>, %67, %cst_42 [2] : vector<2x8x8xf32> to vector<2x8xf32>
    %69 = vector.shape_cast %68 : vector<2x8xf32> to vector<2x8x1xf32>
    %70 = vector.broadcast %69 : vector<2x8x1xf32> to vector<2x8x8xf32>
    %71 = arith.subf %67, %70 : vector<2x8x8xf32>
    %72 = math.exp %71 : vector<2x8x8xf32>
    %cst_43 = arith.constant dense<0.000000e+00> : vector<2x8xf32>
    %73 = vector.multi_reduction <add>, %72, %cst_43 [2] : vector<2x8x8xf32> to vector<2x8xf32>
    %74 = vector.shape_cast %73 : vector<2x8xf32> to vector<2x8x1xf32>
    %75 = vector.broadcast %74 : vector<2x8x1xf32> to vector<2x8x8xf32>
    %76 = arith.divf %72, %75 : vector<2x8x8xf32>
    %77 = arith.addf %56, %76 : vector<2x8x8xf32>
    "tpu.trace_start"() <{level = 10 : i32, message = "bqk,bkc->bqc"}> : () -> ()
    %cst_44 = arith.constant dense<0.000000e+00> : vector<2x8x8xf32>
    %78 = tpu.matmul %76, %66, %cst_44 {dimension_numbers = #tpu.dot_dimension_numbers<[2], [1], [1], [2], [0, 0, 0, 1, 1, 2], [0], [0]>} : vector<2x8x8xf32>, vector<2x8x8xf32>, vector<2x8x8xf32> -> vector<2x8x8xf32>
    "tpu.trace_stop"() : () -> ()
    %79 = vector.shape_cast %78 : vector<2x8x8xf32> to vector<16x8xf32>
    %80 = vector.extract_strided_slice %4 {offsets = [16, 0], sizes = [8, 32], strides = [1, 1]} : vector<32x32xf32> to vector<8x32xf32>
    %cst_45 = arith.constant dense<0.000000e+00> : vector<16x32xf32>
    %81 = tpu.matmul %79, %80, %cst_45 {dimension_numbers = #tpu.dot_dimension_numbers<[1], [0], [0], [1], [0, 0, 1, 1], [], []>} : vector<16x8xf32>, vector<8x32xf32>, vector<16x32xf32> -> vector<16x32xf32>
    %82 = arith.addf %61, %81 : vector<16x32xf32>
    %83 = vector.extract_strided_slice %17 {offsets = [0, 0, 24], sizes = [2, 8, 8], strides = [1, 1, 1]} : vector<2x8x96xf32> to vector<2x8x8xf32>
    %cst_46 = arith.constant 0.353553385 : f32
    %84 = vector.broadcast %cst_46 : f32 to vector<2x8x8xf32>
    %85 = arith.mulf %83, %84 : vector<2x8x8xf32>
    %86 = vector.extract_strided_slice %17 {offsets = [0, 0, 56], sizes = [2, 8, 8], strides = [1, 1, 1]} : vector<2x8x96xf32> to vector<2x8x8xf32>
    %87 = vector.extract_strided_slice %17 {offsets = [0, 0, 88], sizes = [2, 8, 8], strides = [1, 1, 1]} : vector<2x8x96xf32> to vector<2x8x8xf32>
    "tpu.trace_start"() <{level = 10 : i32, message = "bqc,bkc->bqk"}> : () -> ()
    %cst_47 = arith.constant dense<0.000000e+00> : vector<2x8x8xf32>
    %88 = tpu.matmul %85, %86, %cst_47 {dimension_numbers = #tpu.dot_dimension_numbers<[2], [2], [1], [1], [0, 0, 0, 1, 1, 1], [0], [0]>} : vector<2x8x8xf32>, vector<2x8x8xf32>, vector<2x8x8xf32> -> vector<2x8x8xf32>
    "tpu.trace_stop"() : () -> ()
    %cst_48 = arith.constant dense<0xFF800000> : vector<2x8xf32>
    %89 = vector.multi_reduction <maximumf>, %88, %cst_48 [2] : vector<2x8x8xf32> to vector<2x8xf32>
    %90 = vector.shape_cast %89 : vector<2x8xf32> to vector<2x8x1xf32>
    %91 = vector.broadcast %90 : vector<2x8x1xf32> to vector<2x8x8xf32>
    %92 = arith.subf %88, %91 : vector<2x8x8xf32>
    %93 = math.exp %92 : vector<2x8x8xf32>
    %cst_49 = arith.constant dense<0.000000e+00> : vector<2x8xf32>
    %94 = vector.multi_reduction <add>, %93, %cst_49 [2] : vector<2x8x8xf32> to vector<2x8xf32>
    %95 = vector.shape_cast %94 : vector<2x8xf32> to vector<2x8x1xf32>
    %96 = vector.broadcast %95 : vector<2x8x1xf32> to vector<2x8x8xf32>
    %97 = arith.divf %93, %96 : vector<2x8x8xf32>
    %98 = arith.addf %77, %97 : vector<2x8x8xf32>
    "tpu.trace_start"() <{level = 10 : i32, message = "bqk,bkc->bqc"}> : () -> ()
    %cst_50 = arith.constant dense<0.000000e+00> : vector<2x8x8xf32>
    %99 = tpu.matmul %97, %87, %cst_50 {dimension_numbers = #tpu.dot_dimension_numbers<[2], [1], [1], [2], [0, 0, 0, 1, 1, 2], [0], [0]>} : vector<2x8x8xf32>, vector<2x8x8xf32>, vector<2x8x8xf32> -> vector<2x8x8xf32>
    "tpu.trace_stop"() : () -> ()
    %100 = vector.shape_cast %99 : vector<2x8x8xf32> to vector<16x8xf32>
    %101 = vector.extract_strided_slice %4 {offsets = [24, 0], sizes = [8, 32], strides = [1, 1]} : vector<32x32xf32> to vector<8x32xf32>
    %cst_51 = arith.constant dense<0.000000e+00> : vector<16x32xf32>
    %102 = tpu.matmul %100, %101, %cst_51 {dimension_numbers = #tpu.dot_dimension_numbers<[1], [0], [0], [1], [0, 0, 1, 1], [], []>} : vector<16x8xf32>, vector<8x32xf32>, vector<16x32xf32> -> vector<16x32xf32>
    %103 = arith.addf %82, %102 : vector<16x32xf32>
    %cst_52 = arith.constant 2.500000e-01 : f32
    %104 = vector.broadcast %cst_52 : f32 to vector<2x8x8xf32>
    %105 = arith.mulf %98, %104 : vector<2x8x8xf32>
    %c0_53 = arith.constant 0 : index
    %c0_54 = arith.constant 0 : index
    %c0_55 = arith.constant 0 : index
    %c0_56 = arith.constant 0 : index
    %106 = vector.load %arg14[%c0_53, %c0_54, %c0_55, %c0_56] : memref<2x2x8x8xf32, #tpu.memory_space<vmem>>, vector<1x2x8x8xf32>
    %107 = vector.shape_cast %106 : vector<1x2x8x8xf32> to vector<2x8x8xf32>
    %108 = vector.shape_cast %105 : vector<2x8x8xf32> to vector<1x2x8x8xf32>
    tpu.vector_store %arg14[%c0_53, %c0_54, %c0_55, %c0_56], %108 {strides = array<i32>} : memref<2x2x8x8xf32, #tpu.memory_space<vmem>>, vector<1x2x8x8xf32>,
    %109 = arith.addf %1, %103 : vector<16x32xf32>
    %110 = vector.broadcast %5 : vector<1x32xf32> to vector<16x32xf32>
    %111 = arith.addf %109, %110 : vector<16x32xf32>
    %cst_57 = arith.constant dense<0.000000e+00> : vector<16xf32>
    %112 = vector.multi_reduction <add>, %111, %cst_57 [1] : vector<16x32xf32> to vector<16xf32>
    %113 = vector.shape_cast %112 : vector<16xf32> to vector<16x1xf32>
    %cst_58 = arith.constant 3.200000e+01 : f32
    %114 = vector.broadcast %cst_58 : f32 to vector<16x1xf32>
    %115 = arith.divf %113, %114 : vector<16x1xf32>
    %116 = vector.broadcast %115 : vector<16x1xf32> to vector<16x32xf32>
    %117 = arith.subf %111, %116 : vector<16x32xf32>
    %118 = arith.mulf %117, %117 : vector<16x32xf32>
    %cst_59 = arith.constant dense<0.000000e+00> : vector<16xf32>
    %119 = vector.multi_reduction <add>, %118, %cst_59 [1] : vector<16x32xf32> to vector<16xf32>
    %120 = vector.shape_cast %119 : vector<16xf32> to vector<16x1xf32>
    %cst_60 = arith.constant 3.200000e+01 : f32
    %121 = vector.broadcast %cst_60 : f32 to vector<16x1xf32>
    %122 = arith.divf %120, %121 : vector<16x1xf32>
    %cst_61 = arith.constant 9.99999974E-6 : f32
    %123 = vector.broadcast %cst_61 : f32 to vector<16x1xf32>
    %124 = arith.addf %122, %123 : vector<16x1xf32>
    %125 = math.rsqrt %124 : vector<16x1xf32>
    %126 = vector.broadcast %125 : vector<16x1xf32> to vector<16x32xf32>
    %127 = arith.mulf %117, %126 : vector<16x32xf32>
    %128 = vector.broadcast %10 : vector<1x32xf32> to vector<16x32xf32>
    %129 = arith.mulf %127, %128 : vector<16x32xf32>
    %130 = vector.broadcast %11 : vector<1x32xf32> to vector<16x32xf32>
    %131 = arith.addf %129, %130 : vector<16x32xf32>
    %cst_62 = arith.constant dense<0.000000e+00> : vector<16x64xf32>
    %132 = tpu.matmul %131, %6, %cst_62 {dimension_numbers = #tpu.dot_dimension_numbers<[1], [0], [0], [1], [0, 0, 1, 1], [], []>} : vector<16x32xf32>, vector<32x64xf32>, vector<16x64xf32> -> vector<16x64xf32>
    %133 = vector.broadcast %7 : vector<1x64xf32> to vector<16x64xf32>
    %134 = arith.addf %132, %133 : vector<16x64xf32>
    %cst_63 = arith.constant 0.000000e+00 : f32
    %135 = vector.broadcast %cst_63 : f32 to vector<16x64xf32>
    %136 = arith.maximumf %134, %135 : vector<16x64xf32>
    %cst_64 = arith.constant dense<0.000000e+00> : vector<16x32xf32>
    %137 = tpu.matmul %136, %8, %cst_64 {dimension_numbers = #tpu.dot_dimension_numbers<[1], [0], [0], [1], [0, 0, 1, 1], [], []>} : vector<16x64xf32>, vector<64x32xf32>, vector<16x32xf32> -> vector<16x32xf32>
    %138 = vector.broadcast %9 : vector<1x32xf32> to vector<16x32xf32>
    %139 = arith.addf %137, %138 : vector<16x32xf32>
    %140 = arith.addf %131, %139 : vector<16x32xf32>
    %cst_65 = arith.constant dense<0.000000e+00> : vector<16xf32>
    %141 = vector.multi_reduction <add>, %140, %cst_65 [1] : vector<16x32xf32> to vector<16xf32>
    %142 = vector.shape_cast %141 : vector<16xf32> to vector<16x1xf32>
    %cst_66 = arith.constant 3.200000e+01 : f32
    %143 = vector.broadcast %cst_66 : f32 to vector<16x1xf32>
    %144 = arith.divf %142, %143 : vector<16x1xf32>
    %145 = vector.broadcast %144 : vector<16x1xf32> to vector<16x32xf32>
    %146 = arith.subf %140, %145 : vector<16x32xf32>
    %147 = arith.mulf %146, %146 : vector<16x32xf32>
    %cst_67 = arith.constant dense<0.000000e+00> : vector<16xf32>
    %148 = vector.multi_reduction <add>, %147, %cst_67 [1] : vector<16x32xf32> to vector<16xf32>
    %149 = vector.shape_cast %148 : vector<16xf32> to vector<16x1xf32>
    %cst_68 = arith.constant 3.200000e+01 : f32
    %150 = vector.broadcast %cst_68 : f32 to vector<16x1xf32>
    %151 = arith.divf %149, %150 : vector<16x1xf32>
    %cst_69 = arith.constant 9.99999974E-6 : f32
    %152 = vector.broadcast %cst_69 : f32 to vector<16x1xf32>
    %153 = arith.addf %151, %152 : vector<16x1xf32>
    %154 = math.rsqrt %153 : vector<16x1xf32>
    %155 = vector.broadcast %154 : vector<16x1xf32> to vector<16x32xf32>
    %156 = arith.mulf %146, %155 : vector<16x32xf32>
    %157 = vector.broadcast %12 : vector<1x32xf32> to vector<16x32xf32>
    %158 = arith.mulf %156, %157 : vector<16x32xf32>
    %159 = vector.broadcast %13 : vector<1x32xf32> to vector<16x32xf32>
    %160 = arith.addf %158, %159 : vector<16x32xf32>
    %cst_70 = arith.constant dense<0.000000e+00> : vector<16x96xf32>
    %161 = tpu.matmul %160, %2, %cst_70 {dimension_numbers = #tpu.dot_dimension_numbers<[1], [0], [0], [1], [0, 0, 1, 1], [], []>} : vector<16x32xf32>, vector<32x96xf32>, vector<16x96xf32> -> vector<16x96xf32>
    %162 = vector.broadcast %3 : vector<1x96xf32> to vector<16x96xf32>
    %163 = arith.addf %161, %162 : vector<16x96xf32>
    %164 = vector.shape_cast %163 : vector<16x96xf32> to vector<2x8x96xf32>
    %cst_71 = arith.constant 0.000000e+00 : f32
    %165 = vector.broadcast %cst_71 : f32 to vector<16x32xf32>
    %cst_72 = arith.constant 0.000000e+00 : f32
    %166 = vector.broadcast %cst_72 : f32 to vector<2x8x8xf32>
    %167 = vector.extract_strided_slice %164 {offsets = [0, 0, 0], sizes = [2, 8, 8], strides = [1, 1, 1]} : vector<2x8x96xf32> to vector<2x8x8xf32>
    %cst_73 = arith.constant 0.353553385 : f32
    %168 = vector.broadcast %cst_73 : f32 to vector<2x8x8xf32>
    %169 = arith.mulf %167, %168 : vector<2x8x8xf32>
    %170 = vector.extract_strided_slice %164 {offsets = [0, 0, 32], sizes = [2, 8, 8], strides = [1, 1, 1]} : vector<2x8x96xf32> to vector<2x8x8xf32>
    %171 = vector.extract_strided_slice %164 {offsets = [0, 0, 64], sizes = [2, 8, 8], strides = [1, 1, 1]} : vector<2x8x96xf32> to vector<2x8x8xf32>
    "tpu.trace_start"() <{level = 10 : i32, message = "bqc,bkc->bqk"}> : () -> ()
    %cst_74 = arith.constant dense<0.000000e+00> : vector<2x8x8xf32>
    %172 = tpu.matmul %169, %170, %cst_74 {dimension_numbers = #tpu.dot_dimension_numbers<[2], [2], [1], [1], [0, 0, 0, 1, 1, 1], [0], [0]>} : vector<2x8x8xf32>, vector<2x8x8xf32>, vector<2x8x8xf32> -> vector<2x8x8xf32>
    "tpu.trace_stop"() : () -> ()
    %cst_75 = arith.constant dense<0xFF800000> : vector<2x8xf32>
    %173 = vector.multi_reduction <maximumf>, %172, %cst_75 [2] : vector<2x8x8xf32> to vector<2x8xf32>
    %174 = vector.shape_cast %173 : vector<2x8xf32> to vector<2x8x1xf32>
    %175 = vector.broadcast %174 : vector<2x8x1xf32> to vector<2x8x8xf32>
    %176 = arith.subf %172, %175 : vector<2x8x8xf32>
    %177 = math.exp %176 : vector<2x8x8xf32>
    %cst_76 = arith.constant dense<0.000000e+00> : vector<2x8xf32>
    %178 = vector.multi_reduction <add>, %177, %cst_76 [2] : vector<2x8x8xf32> to vector<2x8xf32>
    %179 = vector.shape_cast %178 : vector<2x8xf32> to vector<2x8x1xf32>
    %180 = vector.broadcast %179 : vector<2x8x1xf32> to vector<2x8x8xf32>
    %181 = arith.divf %177, %180 : vector<2x8x8xf32>
    %182 = arith.addf %166, %181 : vector<2x8x8xf32>
    "tpu.trace_start"() <{level = 10 : i32, message = "bqk,bkc->bqc"}> : () -> ()
    %cst_77 = arith.constant dense<0.000000e+00> : vector<2x8x8xf32>
    %183 = tpu.matmul %181, %171, %cst_77 {dimension_numbers = #tpu.dot_dimension_numbers<[2], [1], [1], [2], [0, 0, 0, 1, 1, 2], [0], [0]>} : vector<2x8x8xf32>, vector<2x8x8xf32>, vector<2x8x8xf32> -> vector<2x8x8xf32>
    "tpu.trace_stop"() : () -> ()
    %184 = vector.shape_cast %183 : vector<2x8x8xf32> to vector<16x8xf32>
    %185 = vector.extract_strided_slice %4 {offsets = [0, 0], sizes = [8, 32], strides = [1, 1]} : vector<32x32xf32> to vector<8x32xf32>
    %cst_78 = arith.constant dense<0.000000e+00> : vector<16x32xf32>
    %186 = tpu.matmul %184, %185, %cst_78 {dimension_numbers = #tpu.dot_dimension_numbers<[1], [0], [0], [1], [0, 0, 1, 1], [], []>} : vector<16x8xf32>, vector<8x32xf32>, vector<16x32xf32> -> vector<16x32xf32>
    %187 = arith.addf %165, %186 : vector<16x32xf32>
    %188 = vector.extract_strided_slice %164 {offsets = [0, 0, 8], sizes = [2, 8, 8], strides = [1, 1, 1]} : vector<2x8x96xf32> to vector<2x8x8xf32>
    %cst_79 = arith.constant 0.353553385 : f32
    %189 = vector.broadcast %cst_79 : f32 to vector<2x8x8xf32>
    %190 = arith.mulf %188, %189 : vector<2x8x8xf32>
    %191 = vector.extract_strided_slice %164 {offsets = [0, 0, 40], sizes = [2, 8, 8], strides = [1, 1, 1]} : vector<2x8x96xf32> to vector<2x8x8xf32>
    %192 = vector.extract_strided_slice %164 {offsets = [0, 0, 72], sizes = [2, 8, 8], strides = [1, 1, 1]} : vector<2x8x96xf32> to vector<2x8x8xf32>
    "tpu.trace_start"() <{level = 10 : i32, message = "bqc,bkc->bqk"}> : () -> ()
    %cst_80 = arith.constant dense<0.000000e+00> : vector<2x8x8xf32>
    %193 = tpu.matmul %190, %191, %cst_80 {dimension_numbers = #tpu.dot_dimension_numbers<[2], [2], [1], [1], [0, 0, 0, 1, 1, 1], [0], [0]>} : vector<2x8x8xf32>, vector<2x8x8xf32>, vector<2x8x8xf32> -> vector<2x8x8xf32>
    "tpu.trace_stop"() : () -> ()
    %cst_81 = arith.constant dense<0xFF800000> : vector<2x8xf32>
    %194 = vector.multi_reduction <maximumf>, %193, %cst_81 [2] : vector<2x8x8xf32> to vector<2x8xf32>
    %195 = vector.shape_cast %194 : vector<2x8xf32> to vector<2x8x1xf32>
    %196 = vector.broadcast %195 : vector<2x8x1xf32> to vector<2x8x8xf32>
    %197 = arith.subf %193, %196 : vector<2x8x8xf32>
    %198 = math.exp %197 : vector<2x8x8xf32>
    %cst_82 = arith.constant dense<0.000000e+00> : vector<2x8xf32>
    %199 = vector.multi_reduction <add>, %198, %cst_82 [2] : vector<2x8x8xf32> to vector<2x8xf32>
    %200 = vector.shape_cast %199 : vector<2x8xf32> to vector<2x8x1xf32>
    %201 = vector.broadcast %200 : vector<2x8x1xf32> to vector<2x8x8xf32>
    %202 = arith.divf %198, %201 : vector<2x8x8xf32>
    %203 = arith.addf %182, %202 : vector<2x8x8xf32>
    "tpu.trace_start"() <{level = 10 : i32, message = "bqk,bkc->bqc"}> : () -> ()
    %cst_83 = arith.constant dense<0.000000e+00> : vector<2x8x8xf32>
    %204 = tpu.matmul %202, %192, %cst_83 {dimension_numbers = #tpu.dot_dimension_numbers<[2], [1], [1], [2], [0, 0, 0, 1, 1, 2], [0], [0]>} : vector<2x8x8xf32>, vector<2x8x8xf32>, vector<2x8x8xf32> -> vector<2x8x8xf32>
    "tpu.trace_stop"() : () -> ()
    %205 = vector.shape_cast %204 : vector<2x8x8xf32> to vector<16x8xf32>
    %206 = vector.extract_strided_slice %4 {offsets = [8, 0], sizes = [8, 32], strides = [1, 1]} : vector<32x32xf32> to vector<8x32xf32>
    %cst_84 = arith.constant dense<0.000000e+00> : vector<16x32xf32>
    %207 = tpu.matmul %205, %206, %cst_84 {dimension_numbers = #tpu.dot_dimension_numbers<[1], [0], [0], [1], [0, 0, 1, 1], [], []>} : vector<16x8xf32>, vector<8x32xf32>, vector<16x32xf32> -> vector<16x32xf32>
    %208 = arith.addf %187, %207 : vector<16x32xf32>
    %209 = vector.extract_strided_slice %164 {offsets = [0, 0, 16], sizes = [2, 8, 8], strides = [1, 1, 1]} : vector<2x8x96xf32> to vector<2x8x8xf32>
    %cst_85 = arith.constant 0.353553385 : f32
    %210 = vector.broadcast %cst_85 : f32 to vector<2x8x8xf32>
    %211 = arith.mulf %209, %210 : vector<2x8x8xf32>
    %212 = vector.extract_strided_slice %164 {offsets = [0, 0, 48], sizes = [2, 8, 8], strides = [1, 1, 1]} : vector<2x8x96xf32> to vector<2x8x8xf32>
    %213 = vector.extract_strided_slice %164 {offsets = [0, 0, 80], sizes = [2, 8, 8], strides = [1, 1, 1]} : vector<2x8x96xf32> to vector<2x8x8xf32>
    "tpu.trace_start"() <{level = 10 : i32, message = "bqc,bkc->bqk"}> : () -> ()
    %cst_86 = arith.constant dense<0.000000e+00> : vector<2x8x8xf32>
    %214 = tpu.matmul %211, %212, %cst_86 {dimension_numbers = #tpu.dot_dimension_numbers<[2], [2], [1], [1], [0, 0, 0, 1, 1, 1], [0], [0]>} : vector<2x8x8xf32>, vector<2x8x8xf32>, vector<2x8x8xf32> -> vector<2x8x8xf32>
    "tpu.trace_stop"() : () -> ()
    %cst_87 = arith.constant dense<0xFF800000> : vector<2x8xf32>
    %215 = vector.multi_reduction <maximumf>, %214, %cst_87 [2] : vector<2x8x8xf32> to vector<2x8xf32>
    %216 = vector.shape_cast %215 : vector<2x8xf32> to vector<2x8x1xf32>
    %217 = vector.broadcast %216 : vector<2x8x1xf32> to vector<2x8x8xf32>
    %218 = arith.subf %214, %217 : vector<2x8x8xf32>
    %219 = math.exp %218 : vector<2x8x8xf32>
    %cst_88 = arith.constant dense<0.000000e+00> : vector<2x8xf32>
    %220 = vector.multi_reduction <add>, %219, %cst_88 [2] : vector<2x8x8xf32> to vector<2x8xf32>
    %221 = vector.shape_cast %220 : vector<2x8xf32> to vector<2x8x1xf32>
    %222 = vector.broadcast %221 : vector<2x8x1xf32> to vector<2x8x8xf32>
    %223 = arith.divf %219, %222 : vector<2x8x8xf32>
    %224 = arith.addf %203, %223 : vector<2x8x8xf32>
    "tpu.trace_start"() <{level = 10 : i32, message = "bqk,bkc->bqc"}> : () -> ()
    %cst_89 = arith.constant dense<0.000000e+00> : vector<2x8x8xf32>
    %225 = tpu.matmul %223, %213, %cst_89 {dimension_numbers = #tpu.dot_dimension_numbers<[2], [1], [1], [2], [0, 0, 0, 1, 1, 2], [0], [0]>} : vector<2x8x8xf32>, vector<2x8x8xf32>, vector<2x8x8xf32> -> vector<2x8x8xf32>
    "tpu.trace_stop"() : () -> ()
    %226 = vector.shape_cast %225 : vector<2x8x8xf32> to vector<16x8xf32>
    %227 = vector.extract_strided_slice %4 {offsets = [16, 0], sizes = [8, 32], strides = [1, 1]} : vector<32x32xf32> to vector<8x32xf32>
    %cst_90 = arith.constant dense<0.000000e+00> : vector<16x32xf32>
    %228 = tpu.matmul %226, %227, %cst_90 {dimension_numbers = #tpu.dot_dimension_numbers<[1], [0], [0], [1], [0, 0, 1, 1], [], []>} : vector<16x8xf32>, vector<8x32xf32>, vector<16x32xf32> -> vector<16x32xf32>
    %229 = arith.addf %208, %228 : vector<16x32xf32>
    %230 = vector.extract_strided_slice %164 {offsets = [0, 0, 24], sizes = [2, 8, 8], strides = [1, 1, 1]} : vector<2x8x96xf32> to vector<2x8x8xf32>
    %cst_91 = arith.constant 0.353553385 : f32
    %231 = vector.broadcast %cst_91 : f32 to vector<2x8x8xf32>
    %232 = arith.mulf %230, %231 : vector<2x8x8xf32>
    %233 = vector.extract_strided_slice %164 {offsets = [0, 0, 56], sizes = [2, 8, 8], strides = [1, 1, 1]} : vector<2x8x96xf32> to vector<2x8x8xf32>
    %234 = vector.extract_strided_slice %164 {offsets = [0, 0, 88], sizes = [2, 8, 8], strides = [1, 1, 1]} : vector<2x8x96xf32> to vector<2x8x8xf32>
    "tpu.trace_start"() <{level = 10 : i32, message = "bqc,bkc->bqk"}> : () -> ()
    %cst_92 = arith.constant dense<0.000000e+00> : vector<2x8x8xf32>
    %235 = tpu.matmul %232, %233, %cst_92 {dimension_numbers = #tpu.dot_dimension_numbers<[2], [2], [1], [1], [0, 0, 0, 1, 1, 1], [0], [0]>} : vector<2x8x8xf32>, vector<2x8x8xf32>, vector<2x8x8xf32> -> vector<2x8x8xf32>
    "tpu.trace_stop"() : () -> ()
    %cst_93 = arith.constant dense<0xFF800000> : vector<2x8xf32>
    %236 = vector.multi_reduction <maximumf>, %235, %cst_93 [2] : vector<2x8x8xf32> to vector<2x8xf32>
    %237 = vector.shape_cast %236 : vector<2x8xf32> to vector<2x8x1xf32>
    %238 = vector.broadcast %237 : vector<2x8x1xf32> to vector<2x8x8xf32>
    %239 = arith.subf %235, %238 : vector<2x8x8xf32>
    %240 = math.exp %239 : vector<2x8x8xf32>
    %cst_94 = arith.constant dense<0.000000e+00> : vector<2x8xf32>
    %241 = vector.multi_reduction <add>, %240, %cst_94 [2] : vector<2x8x8xf32> to vector<2x8xf32>
    %242 = vector.shape_cast %241 : vector<2x8xf32> to vector<2x8x1xf32>
    %243 = vector.broadcast %242 : vector<2x8x1xf32> to vector<2x8x8xf32>
    %244 = arith.divf %240, %243 : vector<2x8x8xf32>
    %245 = arith.addf %224, %244 : vector<2x8x8xf32>
    "tpu.trace_start"() <{level = 10 : i32, message = "bqk,bkc->bqc"}> : () -> ()
    %cst_95 = arith.constant dense<0.000000e+00> : vector<2x8x8xf32>
    %246 = tpu.matmul %244, %234, %cst_95 {dimension_numbers = #tpu.dot_dimension_numbers<[2], [1], [1], [2], [0, 0, 0, 1, 1, 2], [0], [0]>} : vector<2x8x8xf32>, vector<2x8x8xf32>, vector<2x8x8xf32> -> vector<2x8x8xf32>
    "tpu.trace_stop"() : () -> ()
    %247 = vector.shape_cast %246 : vector<2x8x8xf32> to vector<16x8xf32>
    %248 = vector.extract_strided_slice %4 {offsets = [24, 0], sizes = [8, 32], strides = [1, 1]} : vector<32x32xf32> to vector<8x32xf32>
    %cst_96 = arith.constant dense<0.000000e+00> : vector<16x32xf32>
    %249 = tpu.matmul %247, %248, %cst_96 {dimension_numbers = #tpu.dot_dimension_numbers<[1], [0], [0], [1], [0, 0, 1, 1], [], []>} : vector<16x8xf32>, vector<8x32xf32>, vector<16x32xf32> -> vector<16x32xf32>
    %250 = arith.addf %229, %249 : vector<16x32xf32>
    %cst_97 = arith.constant 2.500000e-01 : f32
    %251 = vector.broadcast %cst_97 : f32 to vector<2x8x8xf32>
    %252 = arith.mulf %245, %251 : vector<2x8x8xf32>
    %c1 = arith.constant 1 : index
    %c0_98 = arith.constant 0 : index
    %c0_99 = arith.constant 0 : index
    %c0_100 = arith.constant 0 : index
    %253 = vector.load %arg14[%c1, %c0_98, %c0_99, %c0_100] : memref<2x2x8x8xf32, #tpu.memory_space<vmem>>, vector<1x2x8x8xf32>
    %254 = vector.shape_cast %253 : vector<1x2x8x8xf32> to vector<2x8x8xf32>
    %255 = vector.shape_cast %252 : vector<2x8x8xf32> to vector<1x2x8x8xf32>
    tpu.vector_store %arg14[%c1, %c0_98, %c0_99, %c0_100], %255 {strides = array<i32>} : memref<2x2x8x8xf32, #tpu.memory_space<vmem>>, vector<1x2x8x8xf32>,
    %256 = arith.addf %160, %250 : vector<16x32xf32>
    %257 = vector.broadcast %5 : vector<1x32xf32> to vector<16x32xf32>
    %258 = arith.addf %256, %257 : vector<16x32xf32>
    %cst_101 = arith.constant dense<0.000000e+00> : vector<16xf32>
    %259 = vector.multi_reduction <add>, %258, %cst_101 [1] : vector<16x32xf32> to vector<16xf32>
    %260 = vector.shape_cast %259 : vector<16xf32> to vector<16x1xf32>
    %cst_102 = arith.constant 3.200000e+01 : f32
    %261 = vector.broadcast %cst_102 : f32 to vector<16x1xf32>
    %262 = arith.divf %260, %261 : vector<16x1xf32>
    %263 = vector.broadcast %262 : vector<16x1xf32> to vector<16x32xf32>
    %264 = arith.subf %258, %263 : vector<16x32xf32>
    %265 = arith.mulf %264, %264 : vector<16x32xf32>
    %cst_103 = arith.constant dense<0.000000e+00> : vector<16xf32>
    %266 = vector.multi_reduction <add>, %265, %cst_103 [1] : vector<16x32xf32> to vector<16xf32>
    %267 = vector.shape_cast %266 : vector<16xf32> to vector<16x1xf32>
    %cst_104 = arith.constant 3.200000e+01 : f32
    %268 = vector.broadcast %cst_104 : f32 to vector<16x1xf32>
    %269 = arith.divf %267, %268 : vector<16x1xf32>
    %cst_105 = arith.constant 9.99999974E-6 : f32
    %270 = vector.broadcast %cst_105 : f32 to vector<16x1xf32>
    %271 = arith.addf %269, %270 : vector<16x1xf32>
    %272 = math.rsqrt %271 : vector<16x1xf32>
    %273 = vector.broadcast %272 : vector<16x1xf32> to vector<16x32xf32>
    %274 = arith.mulf %264, %273 : vector<16x32xf32>
    %275 = vector.broadcast %10 : vector<1x32xf32> to vector<16x32xf32>
    %276 = arith.mulf %274, %275 : vector<16x32xf32>
    %277 = vector.broadcast %11 : vector<1x32xf32> to vector<16x32xf32>
    %278 = arith.addf %276, %277 : vector<16x32xf32>
    %cst_106 = arith.constant dense<0.000000e+00> : vector<16x64xf32>
    %279 = tpu.matmul %278, %6, %cst_106 {dimension_numbers = #tpu.dot_dimension_numbers<[1], [0], [0], [1], [0, 0, 1, 1], [], []>} : vector<16x32xf32>, vector<32x64xf32>, vector<16x64xf32> -> vector<16x64xf32>
    %280 = vector.broadcast %7 : vector<1x64xf32> to vector<16x64xf32>
    %281 = arith.addf %279, %280 : vector<16x64xf32>
    %cst_107 = arith.constant 0.000000e+00 : f32
    %282 = vector.broadcast %cst_107 : f32 to vector<16x64xf32>
    %283 = arith.maximumf %281, %282 : vector<16x64xf32>
    %cst_108 = arith.constant dense<0.000000e+00> : vector<16x32xf32>
    %284 = tpu.matmul %283, %8, %cst_108 {dimension_numbers = #tpu.dot_dimension_numbers<[1], [0], [0], [1], [0, 0, 1, 1], [], []>} : vector<16x64xf32>, vector<64x32xf32>, vector<16x32xf32> -> vector<16x32xf32>
    %285 = vector.broadcast %9 : vector<1x32xf32> to vector<16x32xf32>
    %286 = arith.addf %284, %285 : vector<16x32xf32>
    %287 = arith.addf %278, %286 : vector<16x32xf32>
    %cst_109 = arith.constant dense<0.000000e+00> : vector<16xf32>
    %288 = vector.multi_reduction <add>, %287, %cst_109 [1] : vector<16x32xf32> to vector<16xf32>
    %289 = vector.shape_cast %288 : vector<16xf32> to vector<16x1xf32>
    %cst_110 = arith.constant 3.200000e+01 : f32
    %290 = vector.broadcast %cst_110 : f32 to vector<16x1xf32>
    %291 = arith.divf %289, %290 : vector<16x1xf32>
    %292 = vector.broadcast %291 : vector<16x1xf32> to vector<16x32xf32>
    %293 = arith.subf %287, %292 : vector<16x32xf32>
    %294 = arith.mulf %293, %293 : vector<16x32xf32>
    %cst_111 = arith.constant dense<0.000000e+00> : vector<16xf32>
    %295 = vector.multi_reduction <add>, %294, %cst_111 [1] : vector<16x32xf32> to vector<16xf32>
    %296 = vector.shape_cast %295 : vector<16xf32> to vector<16x1xf32>
    %cst_112 = arith.constant 3.200000e+01 : f32
    %297 = vector.broadcast %cst_112 : f32 to vector<16x1xf32>
    %298 = arith.divf %296, %297 : vector<16x1xf32>
    %cst_113 = arith.constant 9.99999974E-6 : f32
    %299 = vector.broadcast %cst_113 : f32 to vector<16x1xf32>
    %300 = arith.addf %298, %299 : vector<16x1xf32>
    %301 = math.rsqrt %300 : vector<16x1xf32>
    %302 = vector.broadcast %301 : vector<16x1xf32> to vector<16x32xf32>
    %303 = arith.mulf %293, %302 : vector<16x32xf32>
    %304 = vector.broadcast %12 : vector<1x32xf32> to vector<16x32xf32>
    %305 = arith.mulf %303, %304 : vector<16x32xf32>
    %306 = vector.broadcast %13 : vector<1x32xf32> to vector<16x32xf32>
    %307 = arith.addf %305, %306 : vector<16x32xf32>
    %308 = vector.shape_cast %307 : vector<16x32xf32> to vector<2x8x32xf32>
    %c0_114 = arith.constant 0 : index
    %c0_115 = arith.constant 0 : index
    %c0_116 = arith.constant 0 : index
    %309 = vector.load %arg13[%c0_114, %c0_115, %c0_116] : memref<2x8x32xf32, #tpu.memory_space<vmem>>, vector<2x8x32xf32>
    tpu.vector_store %arg13[%c0_114, %c0_115, %c0_116], %308 {strides = array<i32>} : memref<2x8x32xf32, #tpu.memory_space<vmem>>, vector<2x8x32xf32>,
    return
  }
}

</mosaic_0001>

<bundles_post_ra>
// kernel: transformer_encoder_forward.1
= control target key start
LH: loop header
LB: loop body
LE: loop exit
PB: predicated region body
PF: predicated region fallthrough
CT: control target
= control target key end

     0   :  { %vm79_vm0 = vcmask 261120   ;;  %s2205_s25 = smov 96   ;;  %s2206_s26 = smov 88   ;;  %vm114_vm1 = vcmask 64512   ;;  %s2842_s1 = inlined_call_operand.vmem [shape: f32[32,96], index: 1, kind: input, shape index: {}]   ;;  %s2843_s2 = inlined_call_operand.vmem [shape: f32[1,96], index: 2, kind: input, shape index: {}]   ;;  %s2844_s0 = inlined_call_operand.vmem [shape: f32[2,8,32], index: 0, kind: input, shape index: {}]   ;;  %s2845_s3 = inlined_call_operand.vmem [shape: f32[32,32], index: 3, kind: input, shape index: {}]   ;;  %s2846_s14 = inlined_call_operand.vmem [shape: f32[2,2,8,8], index: 14, kind: output, shape index: {1}]   ;;  %s2847_s4 = inlined_call_operand.vmem [shape: f32[1,32], index: 4, kind: input, shape index: {}]   ;;  %s2848_s9 = inlined_call_operand.vmem [shape: f32[1,32], index: 9, kind: input, shape index: {}]   ;;  %s2849_s10 = inlined_call_operand.vmem [shape: f32[1,32], index: 10, kind: input, shape index: {}]   ;;  %s2850_s6 = inlined_call_operand.vmem [shape: f32[1,64], index: 6, kind: input, shape index: {}]   ;;  %s2851_s5 = inlined_call_operand.vmem [shape: f32[32,64], index: 5, kind: input, shape index: {}]   ;;  %s2852_s7 = inlined_call_operand.vmem [shape: f32[64,32], index: 7, kind: input, shape index: {}]   ;;  %s2853_s8 = inlined_call_operand.vmem [shape: f32[1,32], index: 8, kind: input, shape index: {}]   ;;  %s2854_s11 = inlined_call_operand.vmem [shape: f32[1,32], index: 11, kind: input, shape index: {}]   ;;  %s2855_s12 = inlined_call_operand.vmem [shape: f32[1,32], index: 12, kind: input, shape index: {}]   ;;  %s2856_s13 = inlined_call_operand.vmem [shape: f32[2,8,32], index: 13, kind: output, shape index: {0}]  }
   0x1   :  { %v2294_v0 = vld [vmem:[%s2842_s1 + $0x18] sm:$0xff]  ;;  %v2299_v1 = vld [vmem:[%s2842_s1 + $0x10] sm:$0xff]  ;;  %v2305_v2 = vld [vmem:[%s2842_s1 + $0x8] sm:$0xff]  ;;  %s2207_s27 = smov 120   ;;  %s2208_s15 = smov 80  }
   0x2   :  { %98 = vmatpush.msra.mxu0 %v2294_v0  ;;  %v2311_v3 = vld [vmem:[%s2842_s1] sm:$0xff]  ;;  %s2204_s1 = smov 64   ;;  %v2345_v12 = vld [vmem:[%s2844_s0 + $0x8] sm:$0xff]  ;;  %s2209_s16 = smov 56  }
   0x3   :  { %v2317_v4 = vld [vmem:[%s2844_s0] sm:$0xff]  ;;  %s2210_s17 = smov 112   ;;  %s2211_s18 = smov 72  }
   0x4   :  { %99 = vmatpush.msra.mxu0 %v2299_v1  ;;  %v2109_v5 = vld [vmem:[%s2843_s2] ss:$0 sm:$0xff]  ;;  %s2212_s19 = smov 104   ;;  %s2213_s22 = smov 48  }
   0x5   :  { %v53_v39 = vld [vmem:[%s2845_s3] sm:$0xff]  ;;  %s2857_s23 = smov 40  }
   0x6   :  { %100 = vmatpush.msra.mxu0 %v2305_v2 }
   0x8   :  { %101 = vmatpush.msra.mxu0 %v2311_v3 }
   0x9   :  { %2019 = vmatmul.msk.f32.vlgmr.msra.gmra.mxu0 %vm79_vm0, %v2317_v4 }
   0xa   :  { %478 = vmatpush.msrb.mxu0 %v53_v39 }
  0x11   :  { %2020 = vmatmul.msk.f32.gmra.mxu0 %vm79_vm0, %v2345_v12 }
  0x86   :  { %v103_v6 = vpop.f32.mrf.mxu0 }
  0x87   :  { %v2325_v7 = vadd.f32 %v2109_v5, %v103_v6 }
  0x89   :  { %218 = vrot.lane.b32.xlu2 %v2325_v7, %s2204_s1  ;;  %112 = vrot.lane.b32.xlu0 %v2325_v7, %s2205_s25  ;;  %v2334_v8 = vmul.f32 0.35355338, %v2325_v7 }
  0x8e   :  { %v106_v15 = vpop.f32.mrf.mxu0 }
  0x8f   :  { %v2350_v16 = vadd.f32 %v2109_v5, %v106_v15 }
  0x91   :  { %272 = vrot.lane.b32.xlu2 %v2325_v7, %s2206_s26  ;;  %v2355_v20 = vmul.f32 0.35355338, %v2350_v16 }
  0x99   :  { %270 = vrot.lane.b32.xlu2 %v2334_v8, %s2207_s27 }
  0xa1   :  { %300 = vrot.lane.b32.xlu2 %v2350_v16, %s2206_s26 }
  0xa9   :  { %298 = vrot.lane.b32.xlu2 %v2355_v20, %s2207_s27 }
  0xe3   :  { %v219_v9 = vpop.permute.xlu2 %218 }
  0xeb   :  { %v273_v11 = vpop.permute.xlu2 %272 }
  0xf3   :  { %v271_v33 = vpop.permute.xlu2 %270 }
  0xfb   :  { %v113_v10 = vpop.permute.xlu0 %112  ;;  %v301_v37 = vpop.permute.xlu2 %300 }
  0xfc   :  { %2021 = vmatpush.xpose.msk.msra.mxu1 %vm114_vm1, %v113_v10 }
  0xff   :  { %2022 = vmatmul.msk.f32.vlgmr.msra.gmra.mxu1 %vm114_vm1, %v2334_v8 }
 0x100   :  { %239 = vmatpush.msrb.mxu1 %v219_v9 }
 0x102   :  { %2027 = vmatpush.xpose.msk.msra.mxu1 %vm114_vm1, %v273_v11 }
 0x103   :  { %v299_v38 = vpop.permute.xlu2 %298 }
 0x17c   :  { %v137_v13 = vpop.f32.mrf.mxu1 }
 0x17d   :  { %v168_v14 = vsel %vm114_vm1, %v137_v13, -inf }
 0x17e   :  { %169 = vmax.xlane.f32.xlu0 %v168_v14 }
 0x1f1   :  { %v170_v17 = vpop.xlane.xlu0 %169 }
 0x1f2   :  { %v174_v18 = vsub.f32 %v137_v13, %v170_v17 }
 0x1f4   :  { %v176_v19 = vmul.f32 1.442695, %v174_v18 }
 0x1f6   :  { %2117 = vpow2.f32 %v176_v19 }
 0x1fc   :  { %v2118_v21 = vpop.eup %2117 }
 0x1fd   :  { %v180_v22 = vsel %vm114_vm1, %v2118_v21, 0.0 }
 0x1fe   :  { %181 = vadd.xlane.f32.xlu1 %v180_v22 }
 0x217   :  { %141 = vrot.lane.b32.xlu1 %v2350_v16, %s2205_s25 }
 0x271   :  { %v182_v23 = vpop.xlane.xlu1 %181 }
 0x272   :  { %2119 = vrcp.f32 %v182_v23  ;;  %v197_v27 = vand.u32 2147483648, %v182_v23  ;;  %v195_v29 = vand.u32 2147483647, %v182_v23  ;;  %vm191_vm3 = vweird.f32 %v182_v23 }
 0x274   :  { %v198_v31 = vor.u32 1.1754944e-38, %v197_v27  ;;  %vm196_vm5 = vcmp.eq.f32.partialorder %v195_v29, 8.507059e+37 }
 0x278   :  { %v2120_v24 = vpop.eup %2119 }
 0x279   :  { %v187_v25 = vmul.f32 %v2120_v24, %v182_v23  ;;  %vm192_vm2 = vweird.f32 %v2120_v24 }
 0x27a   :  { %vm193_vm4 = vmor %vm191_vm3, %vm192_vm2 }
 0x27b   :  { %v188_v26 = vsub.f32 1.0, %v187_v25 }
 0x27d   :  { %v189_v28 = vmul.f32 %v2120_v24, %v188_v26 }
 0x27f   :  { %v190_v30 = vadd.f32 %v2120_v24, %v189_v28 }
 0x281   :  { %v194_v32 = vsel %vm193_vm4, %v2120_v24, %v190_v30 }
 0x282   :  { %v199_v34 = vsel %vm196_vm5, %v198_v31, %v194_v32 }
 0x283   :  { %v2362_v35 = vmul.f32 %v2118_v21, %v199_v34 }
 0x285   :  { %2025 = vmatmul.msk.f32.vlgmr.msrb.gmra.mxu1 %vm114_vm1, %v2362_v35 }
 0x289   :  { %v142_v36 = vpop.permute.xlu1 %141 }
 0x28a   :  { %2023 = vmatpush.xpose.msk.msra.mxu2 %vm114_vm1, %v142_v36 }
 0x28d   :  { %2024 = vmatmul.msk.f32.vlgmr.msra.gmra.mxu2 %vm114_vm1, %v2355_v20  ;;  %2028 = vmatmul.msk.f32.vlgmr.msra.gmra.mxu1 %vm114_vm1, %v271_v33 }
 0x28e   :  { %2029 = vmatpush.xpose.msk.msrb.mxu2 %vm114_vm1, %v301_v37 }
 0x295   :  { %2030 = vmatmul.msk.f32.vlgmr.msrb.gmra.mxu2 %vm114_vm1, %v299_v38 }
 0x302   :  { %v241_v40 = vpop.f32.mrf.mxu1 }
 0x303   :  { %2035 = vmatmul.msk.f32.vlgmr.msrb.gmra.mxu0 %vm114_vm1, %v241_v40 }
 0x30a   :  { %v295_v41 = vpop.f32.mrf.mxu1 }
 0x30b   :  { %v326_v42 = vsel %vm114_vm1, %v295_v41, -inf }
 0x30c   :  { %327 = vmax.xlane.f32.xlu2 %v326_v42 }
 0x310   :  { %v165_v43 = vpop.f32.mrf.mxu2 }
 0x311   :  { %v171_v44 = vsel %vm114_vm1, %v165_v43, -inf }
 0x312   :  { %172 = vmax.xlane.f32.xlu1 %v171_v44 }
 0x318   :  { %v323_v61 = vpop.f32.mrf.mxu2 }
 0x319   :  { %v329_v5 = vsel %vm114_vm1, %v323_v61, -inf }
 0x324   :  { %488 = vrot.lane.b32.xlu2 %v2325_v7, %s2208_s15 }
 0x32b   :  { %376 = vrot.lane.b32.xlu1 %v2325_v7, %s2209_s16 }
 0x32c   :  { %402 = vrot.lane.b32.xlu2 %v2350_v16, %s2209_s16 }
 0x334   :  { %516 = vrot.lane.b32.xlu2 %v2350_v16, %s2208_s15 }
 0x33c   :  { %514 = vrot.lane.b32.xlu2 %v2355_v20, %s2210_s17 }
 0x344   :  { %677 = vrot.lane.b32.xlu2 %v2325_v7, %s2211_s18 }
 0x37f   :  { %v328_v45 = vpop.xlane.xlu2 %327 }
 0x380   :  { %v332_v56 = vsub.f32 %v295_v41, %v328_v45  ;;  %v2423_v41 = vld [vmem:[%s2845_s3 + $0x8] sm:$0xff] }
 0x381   :  { %449 = vmatpush.msra.mxu2 %v2423_v41 }
 0x382   :  { %v334_v57 = vmul.f32 1.442695, %v332_v56 }
 0x385   :  { %v173_v46 = vpop.xlane.xlu1 %172 }
 0x386   :  { %v175_v47 = vsub.f32 %v165_v43, %v173_v46 }
 0x387   :  { %v489_v48 = vpop.permute.xlu2 %488 }
 0x388   :  { %v178_v49 = vmul.f32 1.442695, %v175_v47 }
 0x38a   :  { %2121 = vpow2.f32 %v178_v49 }
 0x38b   :  { %2123 = vpow2.f32 %v334_v57 }
 0x38f   :  { %v403_v50 = vpop.permute.xlu2 %402 }
 0x390   :  { %v2122_v51 = vpop.eup %2121  ;;  %423 = vmatpush.msrb.mxu1 %v403_v50 }
 0x391   :  { %v183_v52 = vsel %vm114_vm1, %v2122_v51, 0.0  ;;  %v2124_v58 = vpop.eup %2123 }
 0x392   :  { %184 = vadd.xlane.f32.xlu0 %v183_v52  ;;  %v338_v59 = vsel %vm114_vm1, %v2124_v58, 0.0 }
 0x397   :  { %v517_v53 = vpop.permute.xlu2 %516 }
 0x398   :  { %2039 = vmatpush.xpose.msk.msra.mxu1 %vm114_vm1, %v517_v53 }
 0x39d   :  { %v377_v21 = vpop.permute.xlu1 %376 }
 0x39f   :  { %v2392_v54 = vpop.permute.xlu2 %514 }
 0x3a6   :  { %244 = vrot.lane.b32.xlu0 %v2350_v16, %s2204_s1 }
 0x3a7   :  { %v678_v55 = vpop.permute.xlu2 %677 }
 0x3a8   :  { %2045 = vmatpush.xpose.msk.msra.mxu0 %vm114_vm1, %v678_v55 }
 0x3d0   :  { %339 = vadd.xlane.f32.xlu0 %v338_v59 }
 0x3e4   :  { %486 = vrot.lane.b32.xlu0 %v2334_v8, %s2210_s17 }
 0x405   :  { %v185_v60 = vpop.xlane.xlu0 %184 }
 0x406   :  { %2125 = vrcp.f32 %v185_v60  ;;  %v212_v9 = vand.u32 2147483648, %v185_v60  ;;  %v210_v11 = vand.u32 2147483647, %v185_v60  ;;  %vm206_vm7 = vweird.f32 %v185_v60 }
 0x408   :  { %v213_v14 = vor.u32 1.1754944e-38, %v212_v9  ;;  %vm211_vm9 = vcmp.eq.f32.partialorder %v210_v11, 8.507059e+37 }
 0x40c   :  { %v2126_v62 = vpop.eup %2125 }
 0x40d   :  { %v202_v63 = vmul.f32 %v2126_v62, %v185_v60  ;;  %vm207_vm6 = vweird.f32 %v2126_v62 }
 0x40e   :  { %330 = vmax.xlane.f32.xlu0 %v329_v5  ;;  %vm208_vm8 = vmor %vm206_vm7, %vm207_vm6 }
 0x40f   :  { %v203_v6 = vsub.f32 1.0, %v202_v63  ;;  %v2437_v63 = vpop.f32.mrf.mxu0 }
 0x411   :  { %v204_v10 = vmul.f32 %v2126_v62, %v203_v6 }
 0x413   :  { %v205_v13 = vadd.f32 %v2126_v62, %v204_v10 }
 0x415   :  { %v209_v15 = vsel %vm208_vm8, %v2126_v62, %v205_v13 }
 0x416   :  { %v214_v17 = vsel %vm211_vm9, %v213_v14, %v209_v15 }
 0x417   :  { %v2401_v18 = vmul.f32 %v2122_v51, %v214_v17 }
 0x418   :  { %v245_v19 = vpop.permute.xlu0 %244 }
 0x419   :  { %265 = vmatpush.msra.mxu3 %v245_v19 }
 0x41a   :  { %2026 = vmatmul.msk.f32.vlgmr.msra.gmra.mxu3 %vm114_vm1, %v2401_v18 }
 0x41b   :  { %397 = vmatpush.msrb.mxu3 %v377_v21 }
 0x41d   :  { %2037 = vmatpush.xpose.msk.msra.mxu3 %vm114_vm1, %v489_v48 }
 0x422   :  { %675 = vrot.lane.b32.xlu0 %v2334_v8, %s2212_s19 }
 0x42a   :  { %705 = vrot.lane.b32.xlu0 %v2350_v16, %s2211_s18 }
 0x432   :  { %703 = vrot.lane.b32.xlu0 %v2355_v20, %s2212_s19 }
 0x443   :  { %v340_v22 = vpop.xlane.xlu0 %339 }
 0x444   :  { %2127 = vrcp.f32 %v340_v22  ;;  %v355_v26 = vand.u32 2147483648, %v340_v22  ;;  %v353_v28 = vand.u32 2147483647, %v340_v22  ;;  %vm349_vm11 = vweird.f32 %v340_v22 }
 0x446   :  { %v356_v30 = vor.u32 1.1754944e-38, %v355_v26  ;;  %vm354_vm13 = vcmp.eq.f32.partialorder %v353_v28, 8.507059e+37 }
 0x44a   :  { %v2128_v23 = vpop.eup %2127 }
 0x44b   :  { %v345_v24 = vmul.f32 %v2128_v23, %v340_v22  ;;  %vm350_vm10 = vweird.f32 %v2128_v23 }
 0x44c   :  { %vm351_vm12 = vmor %vm349_vm11, %vm350_vm10 }
 0x44d   :  { %v346_v25 = vsub.f32 1.0, %v345_v24 }
 0x44f   :  { %v347_v27 = vmul.f32 %v2128_v23, %v346_v25 }
 0x451   :  { %v348_v29 = vadd.f32 %v2128_v23, %v347_v27 }
 0x453   :  { %v352_v8 = vsel %vm351_vm12, %v2128_v23, %v348_v29 }
 0x454   :  { %v357_v31 = vsel %vm354_vm13, %v356_v30, %v352_v8 }
 0x455   :  { %v2412_v32 = vmul.f32 %v2124_v58, %v357_v31 }
 0x456   :  { %v487_v20 = vpop.permute.xlu0 %486 }
 0x457   :  { %2031 = vmatmul.msk.f32.vlgmr.msrb.gmra.mxu3 %vm114_vm1, %v2412_v32  ;;  %v374_v27 = vadd.f32 %v2412_v32, %v2362_v35 }
 0x45f   :  { %2038 = vmatmul.msk.f32.vlgmr.msra.gmra.mxu3 %vm114_vm1, %v487_v20 }
 0x481   :  { %v331_v33 = vpop.xlane.xlu0 %330 }
 0x482   :  { %v333_v34 = vsub.f32 %v323_v61, %v331_v33 }
 0x484   :  { %v336_v36 = vmul.f32 1.442695, %v333_v34 }
 0x486   :  { %2129 = vpow2.f32 %v336_v36 }
 0x48c   :  { %v2130_v37 = vpop.eup %2129 }
 0x48d   :  { %v341_v38 = vsel %vm114_vm1, %v2130_v37, 0.0 }
 0x48e   :  { %342 = vadd.xlane.f32.xlu1 %v341_v38 }
 0x494   :  { %v676_v40 = vpop.permute.xlu0 %675 }
 0x49c   :  { %v706_v29 = vpop.permute.xlu0 %705 }
 0x49d   :  { %v267_v39 = vpop.f32.mrf.mxu3 }
 0x49e   :  { %2036 = vmatmul.msk.f32.gmra.mxu0 %vm114_vm1, %v267_v39 }
 0x4a4   :  { %v704_v8 = vpop.permute.xlu0 %703 }
 0x4a6   :  { %2046 = vmatmul.msk.f32.vlgmr.msra.gmra.mxu0 %vm114_vm1, %v676_v40  ;;  %v2460_v40 = vld [vmem:[%s2845_s3 + $0x10] sm:$0xff] }
 0x4a7   :  { %665 = vmatpush.msrb.mxu2 %v2460_v40 }
 0x4da   :  { %v399_v42 = vpop.f32.mrf.mxu3 }
 0x4db   :  { %2033 = vmatmul.msk.f32.vlgmr.msra.gmra.mxu2 %vm114_vm1, %v399_v42 }
 0x4e2   :  { %v511_v43 = vpop.f32.mrf.mxu3 }
 0x4e3   :  { %v542_v44 = vsel %vm114_vm1, %v511_v43, -inf }
 0x4e4   :  { %543 = vmax.xlane.f32.xlu2 %v542_v44 }
 0x501   :  { %v343_v45 = vpop.xlane.xlu1 %342 }
 0x502   :  { %2131 = vrcp.f32 %v343_v45  ;;  %v370_v49 = vand.u32 2147483648, %v343_v45  ;;  %v368_v51 = vand.u32 2147483647, %v343_v45  ;;  %vm364_vm15 = vweird.f32 %v343_v45 }
 0x504   :  { %v371_v53 = vor.u32 1.1754944e-38, %v370_v49  ;;  %vm369_vm3 = vcmp.eq.f32.partialorder %v368_v51, 8.507059e+37 }
 0x508   :  { %v2132_v46 = vpop.eup %2131 }
 0x509   :  { %v360_v47 = vmul.f32 %v2132_v46, %v343_v45  ;;  %vm365_vm14 = vweird.f32 %v2132_v46 }
 0x50a   :  { %vm366_vm2 = vmor %vm364_vm15, %vm365_vm14 }
 0x50b   :  { %v361_v48 = vsub.f32 1.0, %v360_v47 }
 0x50d   :  { %v362_v50 = vmul.f32 %v2132_v46, %v361_v48 }
 0x50f   :  { %v363_v52 = vadd.f32 %v2132_v46, %v362_v50 }
 0x511   :  { %v367_v55 = vsel %vm366_vm2, %v2132_v46, %v363_v52 }
 0x512   :  { %v372_v56 = vsel %vm369_vm3, %v371_v53, %v367_v55 }
 0x513   :  { %v2428_v57 = vmul.f32 %v2130_v37, %v372_v56 }
 0x515   :  { %2032 = vmatmul.msk.f32.vlgmr.msrb.gmra.mxu1 %vm114_vm1, %v2428_v57 }
 0x51b   :  { %v2440_v6 = vpop.f32.mrf.mxu0 }
 0x51d   :  { %2040 = vmatmul.msk.f32.vlgmr.msra.gmra.mxu1 %vm114_vm1, %v2392_v54 }
 0x523   :  { %v700_v10 = vpop.f32.mrf.mxu0 }
 0x524   :  { %v731_v11 = vsel %vm114_vm1, %v700_v10, -inf }
 0x557   :  { %v544_v58 = vpop.xlane.xlu2 %543 }
 0x558   :  { %v548_v59 = vsub.f32 %v511_v43, %v544_v58 }
 0x55a   :  { %v550_v60 = vmul.f32 1.442695, %v548_v59 }
 0x55c   :  { %2133 = vpow2.f32 %v550_v60  ;;  %v375_v60 = vadd.f32 %v2428_v57, %v2401_v18 }
 0x562   :  { %v2134_v61 = vpop.eup %2133 }
 0x563   :  { %v554_v62 = vsel %vm114_vm1, %v2134_v61, 0.0 }
 0x564   :  { %555 = vadd.xlane.f32.xlu1 %v554_v62 }
 0x57d   :  { %592 = vrot.lane.b32.xlu1 %v2325_v7, %s2213_s22 }
 0x592   :  { %v425_v5 = vpop.f32.mrf.mxu1 }
 0x593   :  { %2034 = vmatmul.msk.f32.gmra.mxu2 %vm114_vm1, %v425_v5 }
 0x59a   :  { %v539_v54 = vpop.f32.mrf.mxu1 }
 0x59b   :  { %v545_v9 = vsel %vm114_vm1, %v539_v54, -inf }
 0x59c   :  { %546 = vmax.xlane.f32.xlu0 %v545_v9 }
 0x5a7   :  { %732 = vmax.xlane.f32.xlu1 %v731_v11 }
 0x5b0   :  { %781 = vrot.lane.b32.xlu0 %v2325_v7, %s2857_s23 }
 0x5d7   :  { %v556_v13 = vpop.xlane.xlu1 %555 }
 0x5d8   :  { %2135 = vrcp.f32 %v556_v13  ;;  %v571_v19 = vand.u32 2147483648, %v556_v13  ;;  %v569_v22 = vand.u32 2147483647, %v556_v13  ;;  %vm565_vm5 = vweird.f32 %v556_v13 }
 0x5da   :  { %v572_v24 = vor.u32 1.1754944e-38, %v571_v19  ;;  %vm570_vm7 = vcmp.eq.f32.partialorder %v569_v22, 8.507059e+37 }
 0x5de   :  { %v2136_v14 = vpop.eup %2135 }
 0x5df   :  { %v561_v15 = vmul.f32 %v2136_v14, %v556_v13  ;;  %vm566_vm4 = vweird.f32 %v2136_v14 }
 0x5e0   :  { %vm567_vm6 = vmor %vm565_vm5, %vm566_vm4 }
 0x5e1   :  { %v562_v17 = vsub.f32 1.0, %v561_v15 }
 0x5e3   :  { %v563_v21 = vmul.f32 %v2136_v14, %v562_v17 }
 0x5e5   :  { %v564_v23 = vadd.f32 %v2136_v14, %v563_v21 }
 0x5e7   :  { %v568_v25 = vsel %vm567_vm6, %v2136_v14, %v564_v23 }
 0x5e8   :  { %v573_v26 = vsel %vm570_vm7, %v572_v24, %v568_v25 }
 0x5e9   :  { %v574_v7 = vmul.f32 %v2134_v61, %v573_v26 }
 0x5eb   :  { %v2448_v28 = vadd.f32 %v574_v7, %v374_v27 }
 0x5ef   :  { %v593_v30 = vpop.permute.xlu1 %592 }
 0x5f0   :  { %613 = vmatpush.msrb.mxu3 %v593_v30 }
 0x5f1   :  { %2041 = vmatmul.msk.f32.vlgmr.msrb.gmra.mxu3 %vm114_vm1, %v574_v7  ;;  %v2480_v7 = vld [vmem:[%s2845_s3 + $0x18] sm:$0xff] }
 0x5f2   :  { %2047 = vmatpush.xpose.msk.msra.mxu3 %vm114_vm1, %v706_v29 }
 0x5f6   :  { %854 = vmatpush.msrb.mxu3 %v2480_v7 }
 0x5f9   :  { %2048 = vmatmul.msk.f32.vlgmr.msra.gmra.mxu3 %vm114_vm1, %v704_v8 }
 0x60f   :  { %v547_v31 = vpop.xlane.xlu0 %546 }
 0x610   :  { %v549_v20 = vsub.f32 %v539_v54, %v547_v31 }
 0x612   :  { %v552_v33 = vmul.f32 1.442695, %v549_v20 }
 0x614   :  { %2137 = vpow2.f32 %v552_v33 }
 0x61a   :  { %v2138_v34 = vpop.eup %2137  ;;  %v733_v36 = vpop.xlane.xlu1 %732 }
 0x61b   :  { %v737_v35 = vsub.f32 %v700_v10, %v733_v36  ;;  %v557_v32 = vsel %vm114_vm1, %v2138_v34, 0.0 }
 0x61c   :  { %558 = vadd.xlane.f32.xlu2 %v557_v32 }
 0x61d   :  { %v739_v37 = vmul.f32 1.442695, %v737_v35 }
 0x61f   :  { %2139 = vpow2.f32 %v739_v37 }
 0x622   :  { %v782_v54 = vpop.permute.xlu0 %781 }
 0x625   :  { %v2140_v38 = vpop.eup %2139 }
 0x626   :  { %v743_v39 = vsel %vm114_vm1, %v2140_v38, 0.0 }
 0x627   :  { %744 = vadd.xlane.f32.xlu2 %v743_v39 }
 0x63f   :  { %618 = vrot.lane.b32.xlu2 %v2350_v16, %s2213_s22 }
 0x674   :  { %v615_v42 = vpop.f32.mrf.mxu3 }
 0x675   :  { %2043 = vmatmul.msk.f32.vlgmr.msrb.gmra.mxu2 %vm114_vm1, %v615_v42 }
 0x67c   :  { %v728_v43 = vpop.f32.mrf.mxu3 }
 0x67d   :  { %v734_v44 = vsel %vm114_vm1, %v728_v43, -inf }
 0x67e   :  { %735 = vmax.xlane.f32.xlu1 %v734_v44 }
 0x68f   :  { %v559_v45 = vpop.xlane.xlu2 %558 }
 0x690   :  { %2141 = vrcp.f32 %v559_v45  ;;  %v586_v49 = vand.u32 2147483648, %v559_v45  ;;  %v584_v52 = vand.u32 2147483647, %v559_v45  ;;  %vm580_vm9 = vweird.f32 %v559_v45 }
 0x692   :  { %v587_v55 = vor.u32 1.1754944e-38, %v586_v49  ;;  %vm585_vm11 = vcmp.eq.f32.partialorder %v584_v52, 8.507059e+37  ;;  %v2215_v52 = vmov 32.0  }
 0x696   :  { %v2142_v46 = vpop.eup %2141 }
 0x697   :  { %v576_v47 = vmul.f32 %v2142_v46, %v559_v45  ;;  %807 = vrot.lane.b32.xlu1 %v2350_v16, %s2857_s23  ;;  %vm581_vm8 = vweird.f32 %v2142_v46 }
 0x698   :  { %vm582_vm10 = vmor %vm580_vm9, %vm581_vm8 }
 0x699   :  { %v577_v48 = vsub.f32 1.0, %v576_v47  ;;  %v2110_v47 = vld [vmem:[%s2847_s4] ss:$0 sm:$0xff] }
 0x69a   :  { %v745_v50 = vpop.xlane.xlu2 %744 }
 0x69b   :  { %v578_v51 = vmul.f32 %v2142_v46, %v577_v48  ;;  %2143 = vrcp.f32 %v745_v50  ;;  %v760_v10 = vand.u32 2147483648, %v745_v50  ;;  %v758_v13 = vand.u32 2147483647, %v745_v50 }
 0x69c   :  { %vm754_vm13 = vweird.f32 %v745_v50 }
 0x69d   :  { %v579_v53 = vadd.f32 %v2142_v46, %v578_v51  ;;  %v761_v15 = vor.u32 1.1754944e-38, %v760_v10  ;;  %vm759_vm15 = vcmp.eq.f32.partialorder %v758_v13, 8.507059e+37 }
 0x69f   :  { %v583_v56 = vsel %vm582_vm10, %v2142_v46, %v579_v53  ;;  %vm973_vm10 = vcmask 523264  }
 0x6a0   :  { %v588_v58 = vsel %vm585_vm11, %v587_v55, %v583_v56 }
 0x6a1   :  { %v2144_v59 = vpop.eup %2143  ;;  %v589_v61 = vmul.f32 %v2138_v34, %v588_v58 }
 0x6a2   :  { %v750_v16 = vmul.f32 %v2144_v59, %v745_v50  ;;  %v619_v62 = vpop.permute.xlu2 %618  ;;  %vm755_vm12 = vweird.f32 %v2144_v59 }
 0x6a3   :  { %639 = vmatpush.msrb.mxu1 %v619_v62  ;;  %v591_v5 = vadd.f32 %v589_v61, %v375_v60  ;;  %vm756_vm14 = vmor %vm754_vm13, %vm755_vm12 }
 0x6a4   :  { %v751_v9 = vsub.f32 1.0, %v750_v16  ;;  %2042 = vmatmul.msk.f32.vlgmr.msrb.gmra.mxu1 %vm114_vm1, %v589_v61 }
 0x6a5   :  { %802 = vmatpush.msra.mxu1 %v782_v54 }
 0x6a6   :  { %v752_v11 = vmul.f32 %v2144_v59, %v751_v9 }
 0x6a8   :  { %v753_v14 = vadd.f32 %v2144_v59, %v752_v11 }
 0x6aa   :  { %v757_v17 = vsel %vm756_vm14, %v2144_v59, %v753_v14 }
 0x6ab   :  { %v762_v18 = vsel %vm759_vm15, %v761_v15, %v757_v17  ;;  %v2511_v17 = vld [vmem:[%s2851_s5 + $0x18] sm:$0xff] }
 0x6ac   :  { %v763_v57 = vmul.f32 %v2140_v38, %v762_v18  ;;  %v451_v38 = vpop.f32.mrf.mxu2  ;;  %957 = vmatpush.msrb.mxu1 %v2511_v17  ;;  %v2528_v18 = vld [vmem:[%s2851_s5] sm:$0xff] }
 0x6ae   :  { %v779_v19 = vadd.f32 %v763_v57, %v2448_v28  ;;  %2049 = vmatmul.msk.f32.vlgmr.msra.gmra.mxu1 %vm114_vm1, %v763_v57 }
 0x6b0   :  { %v864_v21 = vmul.f32 0.25, %v779_v19 }
 0x6b2   :  { %866 = vst.msk [vmem:[%s2846_s14] sm:$0xff] %vm114_vm1, %v864_v21 }
 0x6b4   :  { %v454_v39 = vpop.f32.mrf.mxu2 }
 0x6b5   :  { %v484_v54 = vadd.f32 %v2440_v6, %v454_v39  ;;  %v2517_v6 = vld [vmem:[%s2851_s5 + $0x10] sm:$0xff]  ;;  %v2581_v39 = vld [vmem:[%s2852_s7 + $0x8] sm:$0xff] }
 0x6b6   :  { %958 = vmatpush.msrb.mxu1 %v2517_v6 }
 0x6f1   :  { %v736_v22 = vpop.xlane.xlu1 %735 }
 0x6f2   :  { %v738_v23 = vsub.f32 %v728_v43, %v736_v22  ;;  %v481_v43 = vadd.f32 %v2437_v63, %v451_v38  ;;  %v2575_v38 = vld [vmem:[%s2852_s7 + $0x10] sm:$0xff] }
 0x6f4   :  { %v741_v24 = vmul.f32 1.442695, %v738_v23 }
 0x6f6   :  { %2145 = vpow2.f32 %v741_v24 }
 0x6f8   :  { %v667_v42 = vpop.f32.mrf.mxu2 }
 0x6f9   :  { %v673_v44 = vadd.f32 %v667_v42, %v481_v43  ;;  %v2587_v42 = vld [vmem:[%s2852_s7] sm:$0xff] }
 0x6fa   :  { %v2593_v43 = vld [vmem:[%s2850_s6] ss:$0 sm:$0xff] }
 0x6fc   :  { %v2146_v25 = vpop.eup %2145 }
 0x6fd   :  { %v746_v26 = vsel %vm114_vm1, %v2146_v25, 0.0 }
 0x6fe   :  { %747 = vadd.xlane.f32.xlu2 %v746_v26 }
 0x709   :  { %v808_v27 = vpop.permute.xlu1 %807 }
 0x70a   :  { %828 = vmatpush.msrb.mxu0 %v808_v27 }
 0x70c   :  { %1077 = vmatpush.msra.mxu0 %v2294_v0 }
 0x70e   :  { %1078 = vmatpush.msra.mxu0 %v2299_v1 }
 0x710   :  { %1079 = vmatpush.msra.mxu0 %v2305_v2 }
 0x712   :  { %1080 = vmatpush.msra.mxu0 %v2311_v3 }
 0x721   :  { %v641_v28 = vpop.f32.mrf.mxu1 }
 0x722   :  { %2044 = vmatmul.msk.f32.gmra.mxu2 %vm114_vm1, %v641_v28  ;;  %v2111_v28 = vld [vmem:[%s2848_s9] ss:$0 sm:$0xff] }
 0x72b   :  { %v804_v29 = vpop.f32.mrf.mxu1 }
 0x72c   :  { %2051 = vmatmul.msk.f32.vlgmr.msrb.gmra.mxu3 %vm114_vm1, %v804_v29 }
 0x771   :  { %v748_v30 = vpop.xlane.xlu2 %747 }
 0x772   :  { %2147 = vrcp.f32 %v748_v30  ;;  %v775_v0 = vand.u32 2147483648, %v748_v30  ;;  %v773_v34 = vand.u32 2147483647, %v748_v30  ;;  %vm769_vm3 = vweird.f32 %v748_v30 }
 0x773   :  { %2149 = vrcp.f32 %v2215_v52 }
 0x774   :  { %v776_v2 = vor.u32 1.1754944e-38, %v775_v0  ;;  %vm774_vm5 = vcmp.eq.f32.partialorder %v773_v34, 8.507059e+37  ;;  %v2543_v0 = vld [vmem:[%s2852_s7 + $0x38] sm:$0xff]  ;;  %v2554_v34 = vld [vmem:[%s2852_s7 + $0x28] sm:$0xff] }
 0x775   :  { %988 = vmatpush.msra.mxu2 %v2543_v0 }
 0x778   :  { %v2148_v8 = vpop.eup %2147 }
 0x779   :  { %v765_v31 = vmul.f32 %v2148_v8, %v748_v30  ;;  %vm770_vm2 = vweird.f32 %v2148_v8  ;;  %v2150_v53 = vpop.eup %2149 }
 0x77a   :  { %vm771_vm4 = vmor %vm769_vm3, %vm770_vm2  ;;  %v882_v63 = vmul.f32 32.0, %v2150_v53  ;;  %vm886_vm6 = vweird.f32 %v2150_v53 }
 0x77b   :  { %v766_v20 = vsub.f32 1.0, %v765_v31 }
 0x77c   :  { %v883_v55 = vsub.f32 1.0, %v882_v63 }
 0x77d   :  { %v767_v33 = vmul.f32 %v2148_v8, %v766_v20 }
 0x77e   :  { %v884_v56 = vmul.f32 %v2150_v53, %v883_v55 }
 0x77f   :  { %v768_v1 = vadd.f32 %v2148_v8, %v767_v33  ;;  %v2548_v33 = vld [vmem:[%s2852_s7 + $0x30] sm:$0xff] }
 0x780   :  { %v885_v58 = vadd.f32 %v2150_v53, %v884_v56  ;;  %989 = vmatpush.msra.mxu2 %v2548_v33 }
 0x781   :  { %v772_v3 = vsel %vm771_vm4, %v2148_v8, %v768_v1  ;;  %v2112_v8 = vld [vmem:[%s2849_s10] ss:$0 sm:$0xff] }
 0x782   :  { %v777_v36 = vsel %vm774_vm5, %v776_v2, %v772_v3  ;;  %v2501_v59 = vsel %vm886_vm6, %v2150_v53, %v885_v58  ;;  %v2560_v1 = vld [vmem:[%s2852_s7 + $0x20] sm:$0xff]  ;;  %990 = vmatpush.msra.mxu2 %v2554_v34  ;;  %v2566_v2 = vld [vmem:[%s2852_s7 + $0x18] sm:$0xff] }
 0x783   :  { %v778_v35 = vmul.f32 %v2146_v25, %v777_v36 }
 0x784   :  { %991 = vmatpush.msra.mxu2 %v2560_v1 }
 0x785   :  { %v780_v32 = vadd.f32 %v778_v35, %v591_v5  ;;  %2050 = vmatmul.msk.f32.vlgmr.msrb.gmra.mxu0 %vm114_vm1, %v778_v35 }
 0x786   :  { %992 = vmatpush.msra.mxu2 %v2566_v2 }
 0x787   :  { %v865_v37 = vmul.f32 0.25, %v780_v32 }
 0x788   :  { %993 = vmatpush.msra.mxu2 %v2575_v38 }
 0x789   :  { %867 = vst.msk [vmem:[%s2846_s14 + $0x8] sm:$0xff] %vm114_vm1, %v865_v37 }
 0x78a   :  { %994 = vmatpush.msra.mxu2 %v2581_v39 }
 0x78c   :  { %995 = vmatpush.msra.mxu2 %v2587_v42 }
 0x7a5   :  { %v670_v5 = vpop.f32.mrf.mxu2 }
 0x7a6   :  { %v674_v9 = vadd.f32 %v670_v5, %v484_v54 }
 0x7af   :  { %v856_v45 = vpop.f32.mrf.mxu3 }
 0x7b0   :  { %v862_v46 = vadd.f32 %v856_v45, %v673_v44 }
 0x7b2   :  { %v868_v48 = vadd.f32 %v862_v46, %v2317_v4 }
 0x7b4   :  { %v873_v49 = vadd.f32 %v2110_v47, %v868_v48 }
 0x7b6   :  { %v875_v50 = vsel %vm79_vm0, %v873_v49, 0.0 }
 0x7b7   :  { %876 = vadd.xlane.f32.xlu0 %v875_v50 }
 0x802   :  { %v830_v51 = vpop.f32.mrf.mxu0 }
 0x803   :  { %2052 = vmatmul.msk.f32.gmra.mxu3 %vm114_vm1, %v830_v51 }
 0x82a   :  { %v877_v60 = vpop.xlane.xlu0 %876 }
 0x82b   :  { %v888_v4 = vmul.f32 %v2501_v59, %v877_v60 }
 0x82d   :  { %v890_v61 = vsub.f32 %v873_v49, %v888_v4 }
 0x82f   :  { %v892_v16 = vmul.f32 %v890_v61, %v890_v61 }
 0x831   :  { %v894_v62 = vsel %vm79_vm0, %v892_v16, 0.0 }
 0x832   :  { %895 = vadd.xlane.f32.xlu1 %v894_v62 }
 0x886   :  { %v859_v10 = vpop.f32.mrf.mxu3 }
 0x887   :  { %v863_v11 = vadd.f32 %v859_v10, %v674_v9 }
 0x889   :  { %v869_v13 = vadd.f32 %v863_v11, %v2345_v12  ;;  %v2523_v12 = vld [vmem:[%s2851_s5 + $0x8] sm:$0xff] }
 0x88a   :  { %959 = vmatpush.msrb.mxu1 %v2523_v12 }
 0x88b   :  { %v874_v14 = vadd.f32 %v2110_v47, %v869_v13 }
 0x88c   :  { %960 = vmatpush.msrb.mxu1 %v2528_v18 }
 0x88d   :  { %v878_v15 = vsel %vm79_vm0, %v874_v14, 0.0 }
 0x88e   :  { %879 = vadd.xlane.f32.xlu2 %v878_v15 }
 0x8a5   :  { %v896_v57 = vpop.xlane.xlu1 %895 }
 0x8a6   :  { %v900_v19 = vmul.f32 %v896_v57, %v2501_v59 }
 0x8a8   :  { %v902_v21 = vadd.f32 1e-05, %v900_v19 }
 0x8aa   :  { %2151 = vrsqrt.f32 %v902_v21  ;;  %vm910_vm8 = vweird.f32 %v902_v21 }
 0x8b0   :  { %v2152_v22 = vpop.eup %2151 }
 0x8b1   :  { %v905_v23 = vmul.f32 %v2152_v22, %v902_v21  ;;  %vm911_vm7 = vweird.f32 %v2152_v22 }
 0x8b2   :  { %vm912_vm9 = vmor %vm910_vm8, %vm911_vm7 }
 0x8b3   :  { %v906_v24 = vmul.f32 %v2152_v22, %v905_v23 }
 0x8b5   :  { %v907_v25 = vmul.f32 0.5, %v906_v24 }
 0x8b7   :  { %v908_v26 = vsub.f32 1.5, %v907_v25 }
 0x8b9   :  { %v909_v27 = vmul.f32 %v2152_v22, %v908_v26 }
 0x8bb   :  { %v913_v29 = vsel %vm912_vm9, %v2152_v22, %v909_v27 }
 0x8bc   :  { %v924_v30 = vmul.f32 %v913_v29, %v890_v61  ;;  %v2602_v61 = vld [vmem:[%s2853_s8] ss:$0 sm:$0xff] }
 0x8be   :  { %v929_v31 = vmul.f32 %v2111_v28, %v924_v30 }
 0x8c0   :  { %v934_v20 = vadd.f32 %v2112_v8, %v929_v31 }
 0x8c2   :  { %2053 = vmatmul.msk.f32.vlgmr.msrb.gmra.mxu1 %vm79_vm0, %v934_v20 }
 0x901   :  { %v880_v3 = vpop.xlane.xlu2 %879 }
 0x902   :  { %v889_v36 = vmul.f32 %v2501_v59, %v880_v3  ;;  %v2616_v3 = vld [vmem:[%s2854_s11] ss:$0 sm:$0xff] }
 0x904   :  { %v891_v35 = vsub.f32 %v874_v14, %v889_v36 }
 0x906   :  { %v893_v32 = vmul.f32 %v891_v35, %v891_v35 }
 0x908   :  { %v897_v37 = vsel %vm79_vm0, %v893_v32, 0.0  ;;  %v2621_v32 = vld [vmem:[%s2855_s12] ss:$0 sm:$0xff] }
 0x909   :  { %898 = vadd.xlane.f32.xlu2 %v897_v37 }
 0x93f   :  { %v962_v44 = vpop.f32.mrf.mxu1 }
 0x940   :  { %v963_v45 = vadd.f32 %v2593_v43, %v962_v44 }
 0x942   :  { %v968_v46 = vmax.f32 %v963_v45, 0.0 }
 0x944   :  { %2055 = vmatmul.msk.f32.vlgmr.msra.gmra.mxu2 %vm973_vm10, %v968_v46 }
 0x97c   :  { %v899_v47 = vpop.xlane.xlu2 %898 }
 0x97d   :  { %v901_v48 = vmul.f32 %v899_v47, %v2501_v59 }
 0x97f   :  { %v903_v49 = vadd.f32 1e-05, %v901_v48 }
 0x981   :  { %2153 = vrsqrt.f32 %v903_v49  ;;  %vm920_vm12 = vweird.f32 %v903_v49 }
 0x987   :  { %v2154_v50 = vpop.eup %2153 }
 0x988   :  { %v915_v51 = vmul.f32 %v2154_v50, %v903_v49  ;;  %vm921_vm11 = vweird.f32 %v2154_v50 }
 0x989   :  { %vm922_vm13 = vmor %vm920_vm12, %vm921_vm11 }
 0x98a   :  { %v916_v52 = vmul.f32 %v2154_v50, %v915_v51  ;;  %v2199_v51 = vld [vmem:[%s2843_s2] ss:$0 sm:$0xff] }
 0x98c   :  { %v917_v53 = vmul.f32 0.5, %v916_v52 }
 0x98e   :  { %v918_v63 = vsub.f32 1.5, %v917_v53 }
 0x990   :  { %v919_v55 = vmul.f32 %v2154_v50, %v918_v63 }
 0x992   :  { %v923_v56 = vsel %vm922_vm13, %v2154_v50, %v919_v55 }
 0x993   :  { %v925_v58 = vmul.f32 %v923_v56, %v891_v35 }
 0x995   :  { %v930_v60 = vmul.f32 %v2111_v28, %v925_v58 }
 0x997   :  { %v935_v4 = vadd.f32 %v2112_v8, %v930_v60 }
 0x999   :  { %2054 = vmatmul.msk.f32.gmra.mxu1 %vm79_vm0, %v935_v4 }
 0x9c7   :  { %v997_v16 = vpop.f32.mrf.mxu2 }
 0x9c8   :  { %v998_v62 = vadd.f32 %v2602_v61, %v997_v16 }
 0x9ca   :  { %v1003_v5 = vadd.f32 %v998_v62, %v934_v20 }
 0x9cc   :  { %v1005_v54 = vsel %vm79_vm0, %v1003_v5, 0.0 }
 0x9cd   :  { %1006 = vadd.xlane.f32.xlu2 %v1005_v54 }
 0xa16   :  { %v965_v9 = vpop.f32.mrf.mxu1 }
 0xa17   :  { %v966_v10 = vadd.f32 %v2593_v43, %v965_v9 }
 0xa19   :  { %v969_v11 = vmax.f32 %v966_v10, 0.0 }
 0xa1b   :  { %2056 = vmatmul.msk.f32.gmra.mxu2 %vm973_vm10, %v969_v11 }
 0xa40   :  { %v1007_v13 = vpop.xlane.xlu2 %1006 }
 0xa41   :  { %v1011_v14 = vmul.f32 %v1007_v13, %v2501_v59 }
 0xa43   :  { %v1013_v15 = vsub.f32 %v1003_v5, %v1011_v14 }
 0xa45   :  { %v1015_v57 = vmul.f32 %v1013_v15, %v1013_v15 }
 0xa47   :  { %v1017_v19 = vsel %vm79_vm0, %v1015_v57, 0.0 }
 0xa48   :  { %1018 = vadd.xlane.f32.xlu0 %v1017_v19 }
 0xa9e   :  { %v1000_v21 = vpop.f32.mrf.mxu2 }
 0xa9f   :  { %v1001_v22 = vadd.f32 %v2602_v61, %v1000_v21 }
 0xaa1   :  { %v1004_v23 = vadd.f32 %v1001_v22, %v935_v4 }
 0xaa3   :  { %v1008_v24 = vsel %vm79_vm0, %v1004_v23, 0.0 }
 0xaa4   :  { %1009 = vadd.xlane.f32.xlu2 %v1008_v24 }
 0xabb   :  { %v1019_v25 = vpop.xlane.xlu0 %1018 }
 0xabc   :  { %v1023_v26 = vmul.f32 %v1019_v25, %v2501_v59 }
 0xabe   :  { %v1025_v27 = vadd.f32 1e-05, %v1023_v26 }
 0xac0   :  { %2155 = vrsqrt.f32 %v1025_v27  ;;  %vm1033_vm15 = vweird.f32 %v1025_v27 }
 0xac6   :  { %v2156_v28 = vpop.eup %2155 }
 0xac7   :  { %v1028_v29 = vmul.f32 %v2156_v28, %v1025_v27  ;;  %vm1034_vm14 = vweird.f32 %v2156_v28 }
 0xac8   :  { %vm1035_vm2 = vmor %vm1033_vm15, %vm1034_vm14 }
 0xac9   :  { %v1029_v30 = vmul.f32 %v2156_v28, %v1028_v29 }
 0xacb   :  { %v1030_v8 = vmul.f32 0.5, %v1029_v30 }
 0xacd   :  { %v1031_v31 = vsub.f32 1.5, %v1030_v8 }
 0xacf   :  { %v1032_v20 = vmul.f32 %v2156_v28, %v1031_v31 }
 0xad1   :  { %v1036_v36 = vsel %vm1035_vm2, %v2156_v28, %v1032_v20 }
 0xad2   :  { %v1047_v35 = vmul.f32 %v1036_v36, %v1013_v15 }
 0xad4   :  { %v1052_v37 = vmul.f32 %v2616_v3, %v1047_v35 }
 0xad6   :  { %v2625_v44 = vadd.f32 %v2621_v32, %v1052_v37 }
 0xad8   :  { %2057 = vmatmul.msk.f32.vlgmr.msra.gmra.mxu0 %vm79_vm0, %v2625_v44 }
 0xb17   :  { %v1010_v45 = vpop.xlane.xlu2 %1009 }
 0xb18   :  { %v1012_v46 = vmul.f32 %v1010_v45, %v2501_v59 }
 0xb1a   :  { %v1014_v47 = vsub.f32 %v1004_v23, %v1012_v46 }
 0xb1c   :  { %v1016_v48 = vmul.f32 %v1014_v47, %v1014_v47 }
 0xb1e   :  { %v1020_v49 = vsel %vm79_vm0, %v1016_v48, 0.0 }
 0xb1f   :  { %1021 = vadd.xlane.f32.xlu0 %v1020_v49 }
 0xb55   :  { %v1082_v50 = vpop.f32.mrf.mxu0 }
 0xb56   :  { %v2634_v52 = vadd.f32 %v2199_v51, %v1082_v50 }
 0xb58   :  { %1091 = vrot.lane.b32.xlu2 %v2634_v52, %s2205_s25  ;;  %1250 = vrot.lane.b32.xlu0 %v2634_v52, %s2206_s26  ;;  %v2641_v53 = vmul.f32 0.35355338, %v2634_v52 }
 0xb5a   :  { %1248 = vrot.lane.b32.xlu1 %v2641_v53, %s2207_s27 }
 0xb92   :  { %v1022_v63 = vpop.xlane.xlu0 %1021 }
 0xb93   :  { %v1024_v55 = vmul.f32 %v1022_v63, %v2501_v59 }
 0xb95   :  { %v1026_v56 = vadd.f32 1e-05, %v1024_v55 }
 0xb97   :  { %2157 = vrsqrt.f32 %v1026_v56  ;;  %vm1043_vm4 = vweird.f32 %v1026_v56 }
 0xb9d   :  { %v2158_v58 = vpop.eup %2157 }
 0xb9e   :  { %v1038_v60 = vmul.f32 %v2158_v58, %v1026_v56  ;;  %vm1044_vm3 = vweird.f32 %v2158_v58 }
 0xb9f   :  { %vm1045_vm5 = vmor %vm1043_vm4, %vm1044_vm3 }
 0xba0   :  { %v1039_v4 = vmul.f32 %v2158_v58, %v1038_v60 }
 0xba2   :  { %v1040_v16 = vmul.f32 0.5, %v1039_v4 }
 0xba4   :  { %v1041_v62 = vsub.f32 1.5, %v1040_v16 }
 0xba6   :  { %v1042_v5 = vmul.f32 %v2158_v58, %v1041_v62 }
 0xba8   :  { %v1046_v54 = vsel %vm1045_vm5, %v2158_v58, %v1042_v5 }
 0xba9   :  { %v1048_v9 = vmul.f32 %v1046_v54, %v1014_v47 }
 0xbab   :  { %v1053_v10 = vmul.f32 %v2616_v3, %v1048_v9 }
 0xbad   :  { %v2648_v11 = vadd.f32 %v2621_v32, %v1053_v10 }
 0xbaf   :  { %2058 = vmatmul.msk.f32.gmra.mxu0 %vm79_vm0, %v2648_v11 }
 0xbb2   :  { %v1092_v13 = vpop.permute.xlu2 %1091 }
 0xbb3   :  { %2059 = vmatpush.xpose.msk.msra.mxu3 %vm114_vm1, %v1092_v13 }
 0xbb6   :  { %2060 = vmatmul.msk.f32.vlgmr.msra.gmra.mxu3 %vm114_vm1, %v2641_v53 }
 0xbca   :  { %v1251_v14 = vpop.permute.xlu0 %1250 }
 0xbcb   :  { %2065 = vmatpush.xpose.msk.msrb.mxu3 %vm114_vm1, %v1251_v14  ;;  %v2200_v14 = vld [vmem:[%s2845_s3] sm:$0xff]  ;;  %s2859_s3 = smov 40  }
 0xbcc   :  { %v1249_v15 = vpop.permute.xlu1 %1248 }
 0xbce   :  { %2066 = vmatmul.msk.f32.vlgmr.msrb.gmra.mxu3 %vm114_vm1, %v1249_v15 }
 0xbcf   :  { %1427 = vmatpush.msra.mxu3 %v2423_v41 }
 0xbd1   :  { %1643 = vmatpush.msrb.mxu3 %v2460_v40 }
 0xc2c   :  { %v1085_v57 = vpop.f32.mrf.mxu0 }
 0xc2d   :  { %v2659_v19 = vadd.f32 %v2199_v51, %v1085_v57 }
 0xc2f   :  { %1119 = vrot.lane.b32.xlu0 %v2659_v19, %s2205_s25  ;;  %v2671_v40 = vmul.f32 0.35355338, %v2659_v19 }
 0xc39   :  { %v1115_v21 = vpop.f32.mrf.mxu3 }
 0xc3a   :  { %v1146_v22 = vsel %vm114_vm1, %v1115_v21, -inf }
 0xc3b   :  { %1147 = vmax.xlane.f32.xlu2 %v1146_v22 }
 0xc51   :  { %v1273_v23 = vpop.f32.mrf.mxu3 }
 0xc52   :  { %v1304_v24 = vsel %vm114_vm1, %v1273_v23, -inf }
 0xc53   :  { %1305 = vmax.xlane.f32.xlu1 %v1304_v24 }
 0xc6c   :  { %1196 = vrot.lane.b32.xlu1 %v2634_v52, %s2204_s1 }
 0xc74   :  { %1466 = vrot.lane.b32.xlu1 %v2634_v52, %s2208_s15 }
 0xca1   :  { %v1120_v41 = vpop.permute.xlu0 %1119 }
 0xca2   :  { %2061 = vmatpush.xpose.msk.msra.mxu1 %vm114_vm1, %v1120_v41 }
 0xca5   :  { %2062 = vmatmul.msk.f32.vlgmr.msra.gmra.mxu1 %vm114_vm1, %v2671_v40 }
 0xcae   :  { %v1148_v25 = vpop.xlane.xlu2 %1147 }
 0xcaf   :  { %v1152_v26 = vsub.f32 %v1115_v21, %v1148_v25 }
 0xcb1   :  { %v1154_v27 = vmul.f32 1.442695, %v1152_v26 }
 0xcb3   :  { %2159 = vpow2.f32 %v1154_v27 }
 0xcb9   :  { %v2160_v28 = vpop.eup %2159 }
 0xcba   :  { %v1158_v29 = vsel %vm114_vm1, %v2160_v28, 0.0 }
 0xcbb   :  { %1159 = vadd.xlane.f32.xlu0 %v1158_v29 }
 0xcc6   :  { %v1306_v30 = vpop.xlane.xlu1 %1305 }
 0xcc7   :  { %v1310_v8 = vsub.f32 %v1273_v23, %v1306_v30 }
 0xcc9   :  { %v1312_v31 = vmul.f32 1.442695, %v1310_v8 }
 0xccb   :  { %2161 = vpow2.f32 %v1312_v31 }
 0xccf   :  { %1354 = vrot.lane.b32.xlu0 %v2634_v52, %s2209_s16 }
 0xcd1   :  { %v2162_v20 = vpop.eup %2161 }
 0xcd2   :  { %v1316_v36 = vsel %vm114_vm1, %v2162_v20, 0.0 }
 0xcd3   :  { %1317 = vadd.xlane.f32.xlu2 %v1316_v36 }
 0xcd7   :  { %1276 = vrot.lane.b32.xlu0 %v2671_v40, %s2207_s27 }
 0xcde   :  { %v1197_v35 = vpop.permute.xlu1 %1196 }
 0xcdf   :  { %1217 = vmatpush.msrb.mxu2 %v1197_v35 }
 0xce6   :  { %v1467_v62 = vpop.permute.xlu1 %1466 }
 0xceb   :  { %1278 = vrot.lane.b32.xlu2 %v2659_v19, %s2206_s26 }
 0xcf3   :  { %1464 = vrot.lane.b32.xlu2 %v2641_v53, %s2210_s17 }
 0xcfb   :  { %1222 = vrot.lane.b32.xlu2 %v2659_v19, %s2204_s1 }
 0xd22   :  { %v1143_v37 = vpop.f32.mrf.mxu1 }
 0xd23   :  { %v1149_v45 = vsel %vm114_vm1, %v1143_v37, -inf }
 0xd24   :  { %1150 = vmax.xlane.f32.xlu0 %v1149_v45 }
 0xd2e   :  { %v1160_v46 = vpop.xlane.xlu0 %1159 }
 0xd2f   :  { %2163 = vrcp.f32 %v1160_v46  ;;  %v1175_v50 = vand.u32 2147483648, %v1160_v46  ;;  %v1173_v63 = vand.u32 2147483647, %v1160_v46  ;;  %vm1169_vm7 = vweird.f32 %v1160_v46 }
 0xd31   :  { %v1176_v56 = vor.u32 1.1754944e-38, %v1175_v50  ;;  %vm1174_vm9 = vcmp.eq.f32.partialorder %v1173_v63, 8.507059e+37 }
 0xd35   :  { %v2164_v47 = vpop.eup %2163 }
 0xd36   :  { %v1165_v48 = vmul.f32 %v2164_v47, %v1160_v46  ;;  %vm1170_vm6 = vweird.f32 %v2164_v47 }
 0xd37   :  { %vm1171_vm8 = vmor %vm1169_vm7, %vm1170_vm6 }
 0xd38   :  { %v1166_v49 = vsub.f32 1.0, %v1165_v48 }
 0xd3a   :  { %v1167_v51 = vmul.f32 %v2164_v47, %v1166_v49 }
 0xd3c   :  { %v1168_v55 = vadd.f32 %v2164_v47, %v1167_v51 }
 0xd3e   :  { %v1172_v58 = vsel %vm1171_vm8, %v2164_v47, %v1168_v55 }
 0xd3f   :  { %v1177_v60 = vsel %vm1174_vm9, %v1176_v56, %v1172_v58 }
 0xd40   :  { %v1178_v4 = vmul.f32 %v2160_v28, %v1177_v60 }
 0xd41   :  { %v1355_v16 = vpop.permute.xlu0 %1354 }
 0xd42   :  { %2063 = vmatmul.msk.f32.vlgmr.msrb.gmra.mxu2 %vm114_vm1, %v1178_v4 }
 0xd43   :  { %1375 = vmatpush.msra.mxu2 %v1355_v16 }
 0xd45   :  { %2075 = vmatpush.xpose.msk.msrb.mxu2 %vm114_vm1, %v1467_v62 }
 0xd46   :  { %v1318_v5 = vpop.xlane.xlu2 %1317 }
 0xd47   :  { %2165 = vrcp.f32 %v1318_v5  ;;  %v1333_v15 = vand.u32 2147483648, %v1318_v5  ;;  %v1331_v22 = vand.u32 2147483647, %v1318_v5  ;;  %vm1327_vm12 = vweird.f32 %v1318_v5 }
 0xd49   :  { %v1277_v57 = vpop.permute.xlu0 %1276  ;;  %v1334_v24 = vor.u32 1.1754944e-38, %v1333_v15  ;;  %vm1332_vm14 = vcmp.eq.f32.partialorder %v1331_v22, 8.507059e+37 }
 0xd4d   :  { %v2166_v54 = vpop.eup %2165 }
 0xd4e   :  { %v1323_v9 = vmul.f32 %v2166_v54, %v1318_v5  ;;  %v1279_v10 = vpop.permute.xlu2 %1278  ;;  %vm1328_vm11 = vweird.f32 %v2166_v54 }
 0xd4f   :  { %2067 = vmatpush.xpose.msk.msrb.mxu1 %vm114_vm1, %v1279_v10  ;;  %vm1329_vm13 = vmor %vm1327_vm12, %vm1328_vm11 }
 0xd50   :  { %v1324_v13 = vsub.f32 1.0, %v1323_v9 }
 0xd52   :  { %v1325_v21 = vmul.f32 %v2166_v54, %v1324_v13  ;;  %2068 = vmatmul.msk.f32.vlgmr.msrb.gmra.mxu1 %vm114_vm1, %v1277_v57 }
 0xd53   :  { %1456 = vmatpush.msra.mxu1 %v2200_v14 }
 0xd54   :  { %v1326_v23 = vadd.f32 %v2166_v54, %v1325_v21 }
 0xd56   :  { %v1330_v41 = vsel %vm1329_vm13, %v2166_v54, %v1326_v23  ;;  %v1465_v25 = vpop.permute.xlu2 %1464 }
 0xd57   :  { %v1335_v26 = vsel %vm1332_vm14, %v1334_v24, %v1330_v41 }
 0xd58   :  { %v1336_v27 = vmul.f32 %v2162_v20, %v1335_v26 }
 0xd5a   :  { %v2695_v28 = vadd.f32 %v1336_v27, %v1178_v4  ;;  %2069 = vmatmul.msk.f32.vlgmr.msra.gmra.mxu2 %vm114_vm1, %v1336_v27 }
 0xd5e   :  { %v1223_v29 = vpop.permute.xlu2 %1222 }
 0xd5f   :  { %1243 = vmatpush.msrb.mxu0 %v1223_v29 }
 0xd62   :  { %2076 = vmatmul.msk.f32.vlgmr.msrb.gmra.mxu2 %vm114_vm1, %v1465_v25 }
 0xd97   :  { %v1151_v30 = vpop.xlane.xlu0 %1150 }
 0xd98   :  { %v1153_v8 = vsub.f32 %v1143_v37, %v1151_v30 }
 0xd9a   :  { %v1156_v31 = vmul.f32 1.442695, %v1153_v8 }
 0xd9c   :  { %2167 = vpow2.f32 %v1156_v31 }
 0xda2   :  { %v2168_v36 = vpop.eup %2167 }
 0xda3   :  { %v1161_v35 = vsel %vm114_vm1, %v2168_v36, 0.0 }
 0xda4   :  { %1162 = vadd.xlane.f32.xlu1 %v1161_v35 }
 0xdbd   :  { %1380 = vrot.lane.b32.xlu1 %v2659_v19, %s2209_s16 }
 0xdc5   :  { %v1219_v20 = vpop.f32.mrf.mxu2  ;;  %1570 = vrot.lane.b32.xlu1 %v2634_v52, %s2213_s22 }
 0xdc6   :  { %2073 = vmatmul.msk.f32.vlgmr.msra.gmra.mxu1 %vm114_vm1, %v1219_v20 }
 0xdcf   :  { %v1301_v45 = vpop.f32.mrf.mxu1 }
 0xdd0   :  { %v1307_v46 = vsel %vm114_vm1, %v1301_v45, -inf }
 0xdd1   :  { %1308 = vmax.xlane.f32.xlu2 %v1307_v46 }
 0xddd   :  { %v1377_v37 = vpop.f32.mrf.mxu2 }
 0xdde   :  { %2071 = vmatmul.msk.f32.vlgmr.msra.gmra.mxu3 %vm114_vm1, %v1377_v37 }
 0xddf   :  { %1944 = vmatpush.msra.mxu3 %v2543_v0 }
 0xde1   :  { %1945 = vmatpush.msra.mxu3 %v2548_v33 }
 0xde3   :  { %1946 = vmatpush.msra.mxu3 %v2554_v34 }
 0xde5   :  { %v1489_v47 = vpop.f32.mrf.mxu2  ;;  %1947 = vmatpush.msra.mxu3 %v2560_v1 }
 0xde6   :  { %v1520_v48 = vsel %vm114_vm1, %v1489_v47, -inf }
 0xde7   :  { %1521 = vmax.xlane.f32.xlu0 %v1520_v48  ;;  %1948 = vmatpush.msra.mxu3 %v2566_v2 }
 0xde9   :  { %1494 = vrot.lane.b32.xlu2 %v2659_v19, %s2208_s15  ;;  %1949 = vmatpush.msra.mxu3 %v2575_v38 }
 0xdeb   :  { %1950 = vmatpush.msra.mxu3 %v2581_v39 }
 0xded   :  { %1951 = vmatpush.msra.mxu3 %v2587_v42 }
 0xdf1   :  { %1683 = vrot.lane.b32.xlu2 %v2659_v19, %s2211_s18 }
 0xdfb   :  { %1492 = vrot.lane.b32.xlu0 %v2671_v40, %s2210_s17 }
 0xe03   :  { %1655 = vrot.lane.b32.xlu0 %v2634_v52, %s2211_s18 }
 0xe17   :  { %v1163_v0 = vpop.xlane.xlu1 %1162 }
 0xe18   :  { %2169 = vrcp.f32 %v1163_v0  ;;  %v1190_v2 = vand.u32 2147483648, %v1163_v0  ;;  %v1188_v39 = vand.u32 2147483647, %v1163_v0  ;;  %vm1184_vm2 = vweird.f32 %v1163_v0 }
 0xe1a   :  { %v1191_v42 = vor.u32 1.1754944e-38, %v1190_v2  ;;  %vm1189_vm4 = vcmp.eq.f32.partialorder %v1188_v39, 8.507059e+37 }
 0xe1e   :  { %v2170_v33 = vpop.eup %2169 }
 0xe1f   :  { %v1180_v34 = vmul.f32 %v2170_v33, %v1163_v0  ;;  %vm1185_vm15 = vweird.f32 %v2170_v33 }
 0xe20   :  { %vm1186_vm3 = vmor %vm1184_vm2, %vm1185_vm15 }
 0xe21   :  { %v1181_v1 = vsub.f32 1.0, %v1180_v34 }
 0xe23   :  { %v1182_v38 = vmul.f32 %v2170_v33, %v1181_v1 }
 0xe25   :  { %v1183_v49 = vadd.f32 %v2170_v33, %v1182_v38 }
 0xe27   :  { %v1187_v50 = vsel %vm1186_vm3, %v2170_v33, %v1183_v49 }
 0xe28   :  { %v1192_v51 = vsel %vm1189_vm4, %v1191_v42, %v1187_v50 }
 0xe29   :  { %v2724_v63 = vmul.f32 %v2168_v36, %v1192_v51 }
 0xe2b   :  { %2064 = vmatmul.msk.f32.vlgmr.msrb.gmra.mxu0 %vm114_vm1, %v2724_v63 }
 0xe2f   :  { %v1381_v55 = vpop.permute.xlu1 %1380 }
 0xe30   :  { %1401 = vmatpush.msra.mxu0 %v1381_v55 }
 0xe37   :  { %v1571_v56 = vpop.permute.xlu1 %1570 }
 0xe38   :  { %1591 = vmatpush.msra.mxu2 %v1571_v56 }
 0xe43   :  { %v2750_v49 = vpop.f32.mrf.mxu1 }
 0xe44   :  { %v1309_v58 = vpop.xlane.xlu2 %1308 }
 0xe45   :  { %v1311_v60 = vsub.f32 %v1301_v45, %v1309_v58 }
 0xe47   :  { %v1314_v4 = vmul.f32 1.442695, %v1311_v60 }
 0xe49   :  { %2171 = vpow2.f32 %v1314_v4 }
 0xe4c   :  { %v1495_v16 = vpop.permute.xlu2 %1494 }
 0xe4d   :  { %2077 = vmatpush.xpose.msk.msrb.mxu0 %vm114_vm1, %v1495_v16 }
 0xe4f   :  { %v2172_v62 = vpop.eup %2171 }
 0xe50   :  { %v1319_v5 = vsel %vm114_vm1, %v2172_v62, 0.0 }
 0xe51   :  { %1320 = vadd.xlane.f32.xlu1 %v1319_v5 }
 0xe54   :  { %v1684_v54 = vpop.permute.xlu2 %1683 }
 0xe55   :  { %2085 = vmatpush.xpose.msk.msrb.mxu2 %vm114_vm1, %v1684_v54 }
 0xe5a   :  { %v1522_v9 = vpop.xlane.xlu0 %1521 }
 0xe5b   :  { %v1526_v10 = vsub.f32 %v1489_v47, %v1522_v9 }
 0xe5d   :  { %v1528_v13 = vmul.f32 1.442695, %v1526_v10 }
 0xe5f   :  { %2173 = vpow2.f32 %v1528_v13 }
 0xe65   :  { %v2174_v14 = vpop.eup %2173 }
 0xe66   :  { %v1532_v15 = vsel %vm114_vm1, %v2174_v14, 0.0 }
 0xe67   :  { %1533 = vadd.xlane.f32.xlu0 %v1532_v15 }
 0xe6a   :  { %1653 = vrot.lane.b32.xlu1 %v2641_v53, %s2212_s19 }
 0xe6d   :  { %v1493_v57 = vpop.permute.xlu0 %1492 }
 0xe75   :  { %v1656_v21 = vpop.permute.xlu0 %1655 }
 0xe76   :  { %2083 = vmatpush.xpose.msk.msrb.mxu1 %vm114_vm1, %v1656_v21 }
 0xe7b   :  { %1681 = vrot.lane.b32.xlu0 %v2671_v40, %s2212_s19 }
 0xea8   :  { %v1245_v22 = vpop.f32.mrf.mxu0 }
 0xea9   :  { %2074 = vmatmul.msk.f32.gmra.mxu1 %vm114_vm1, %v1245_v22 }
 0xec4   :  { %v1321_v23 = vpop.xlane.xlu1 %1320 }
 0xec5   :  { %2175 = vrcp.f32 %v1321_v23  ;;  %v1348_v26 = vand.u32 2147483648, %v1321_v23  ;;  %v1346_v29 = vand.u32 2147483647, %v1321_v23  ;;  %vm1342_vm6 = vweird.f32 %v1321_v23 }
 0xec7   :  { %v1349_v30 = vor.u32 1.1754944e-38, %v1348_v26  ;;  %vm1347_vm8 = vcmp.eq.f32.partialorder %v1346_v29, 8.507059e+37 }
 0xecb   :  { %v2176_v24 = vpop.eup %2175 }
 0xecc   :  { %v1338_v41 = vmul.f32 %v2176_v24, %v1321_v23  ;;  %vm1343_vm5 = vweird.f32 %v2176_v24 }
 0xecd   :  { %vm1344_vm7 = vmor %vm1342_vm6, %vm1343_vm5 }
 0xece   :  { %v1339_v25 = vsub.f32 1.0, %v1338_v41 }
 0xed0   :  { %v1340_v27 = vmul.f32 %v2176_v24, %v1339_v25 }
 0xed2   :  { %v1341_v53 = vadd.f32 %v2176_v24, %v1340_v27 }
 0xed4   :  { %v1345_v8 = vsel %vm1344_vm7, %v2176_v24, %v1341_v53 }
 0xed5   :  { %v1350_v31 = vsel %vm1347_vm8, %v1349_v30, %v1345_v8 }
 0xed6   :  { %v2738_v40 = vmul.f32 %v2172_v62, %v1350_v31 }
 0xed8   :  { %2070 = vmatmul.msk.f32.vlgmr.msra.gmra.mxu0 %vm114_vm1, %v2738_v40 }
 0xeda   :  { %v1534_v36 = vpop.xlane.xlu0 %1533 }
 0xedb   :  { %2177 = vrcp.f32 %v1534_v36  ;;  %v1549_v37 = vand.u32 2147483648, %v1534_v36  ;;  %v1547_v48 = vand.u32 2147483647, %v1534_v36  ;;  %vm1543_vm11 = vweird.f32 %v1534_v36 }
 0xedc   :  { %v1654_v35 = vpop.permute.xlu1 %1653 }
 0xedd   :  { %2084 = vmatmul.msk.f32.vlgmr.msrb.gmra.mxu1 %vm114_vm1, %v1654_v35  ;;  %v1550_v33 = vor.u32 1.1754944e-38, %v1549_v37  ;;  %vm1548_vm13 = vcmp.eq.f32.partialorder %v1547_v48, 8.507059e+37 }
 0xee0   :  { %2078 = vmatmul.msk.f32.vlgmr.msrb.gmra.mxu0 %vm114_vm1, %v1493_v57 }
 0xee1   :  { %v2178_v20 = vpop.eup %2177 }
 0xee2   :  { %v1539_v45 = vmul.f32 %v2178_v20, %v1534_v36  ;;  %vm1544_vm9 = vweird.f32 %v2178_v20 }
 0xee3   :  { %vm1545_vm12 = vmor %vm1543_vm11, %vm1544_vm9 }
 0xee4   :  { %v1540_v46 = vsub.f32 1.0, %v1539_v45 }
 0xee6   :  { %v1541_v47 = vmul.f32 %v2178_v20, %v1540_v46 }
 0xee8   :  { %v1542_v0 = vadd.f32 %v2178_v20, %v1541_v47 }
 0xeea   :  { %v1546_v34 = vsel %vm1545_vm12, %v2178_v20, %v1542_v0 }
 0xeeb   :  { %v1551_v1 = vsel %vm1548_vm13, %v1550_v33, %v1546_v34 }
 0xeec   :  { %v1552_v2 = vmul.f32 %v2174_v14, %v1551_v1 }
 0xeed   :  { %v1682_v39 = vpop.permute.xlu0 %1681 }
 0xeee   :  { %v2745_v38 = vadd.f32 %v1552_v2, %v2695_v28  ;;  %2079 = vmatmul.msk.f32.vlgmr.msra.gmra.mxu2 %vm114_vm1, %v1552_v2 }
 0xeef   :  { %1832 = vmatpush.msra.mxu2 %v2480_v7 }
 0xef6   :  { %2086 = vmatmul.msk.f32.vlgmr.msrb.gmra.mxu2 %vm114_vm1, %v1682_v39 }
 0xf26   :  { %v2752_v42 = vpop.f32.mrf.mxu1 }
 0xf55   :  { %v1403_v50 = vpop.f32.mrf.mxu0 }
 0xf56   :  { %2072 = vmatmul.msk.f32.gmra.mxu3 %vm114_vm1, %v1403_v50 }
 0xf5a   :  { %v1678_v51 = vpop.f32.mrf.mxu1 }
 0xf5b   :  { %v1709_v55 = vsel %vm114_vm1, %v1678_v51, -inf }
 0xf5c   :  { %1710 = vmax.xlane.f32.xlu1 %v1709_v55 }
 0xf5d   :  { %v1517_v28 = vpop.f32.mrf.mxu0 }
 0xf5e   :  { %v1523_v56 = vsel %vm114_vm1, %v1517_v28, -inf }
 0xf5f   :  { %1524 = vmax.xlane.f32.xlu2 %v1523_v56 }
 0xf71   :  { %v1593_v58 = vpop.f32.mrf.mxu2 }
 0xf72   :  { %2081 = vmatmul.msk.f32.vlgmr.msrb.gmra.mxu3 %vm114_vm1, %v1593_v58 }
 0xf79   :  { %v1706_v7 = vpop.f32.mrf.mxu2 }
 0xf7a   :  { %v1712_v60 = vsel %vm114_vm1, %v1706_v7, -inf }
 0xf7b   :  { %1713 = vmax.xlane.f32.xlu0 %v1712_v60 }
 0xfcf   :  { %v1711_v4 = vpop.xlane.xlu1 %1710 }
 0xfd0   :  { %v1715_v16 = vsub.f32 %v1678_v51, %v1711_v4 }
 0xfd2   :  { %v1717_v62 = vmul.f32 1.442695, %v1715_v16  ;;  %v1525_v5 = vpop.xlane.xlu2 %1524 }
 0xfd3   :  { %v1527_v54 = vsub.f32 %v1517_v28, %v1525_v5 }
 0xfd4   :  { %2179 = vpow2.f32 %v1717_v62 }
 0xfd5   :  { %v1530_v9 = vmul.f32 1.442695, %v1527_v54 }
 0xfd7   :  { %2181 = vpow2.f32 %v1530_v9 }
 0xfda   :  { %v2180_v10 = vpop.eup %2179 }
 0xfdb   :  { %v1721_v13 = vsel %vm114_vm1, %v2180_v10, 0.0 }
 0xfdc   :  { %1722 = vadd.xlane.f32.xlu1 %v1721_v13 }
 0xfdd   :  { %v2182_v14 = vpop.eup %2181 }
 0xfde   :  { %v1535_v15 = vsel %vm114_vm1, %v2182_v14, 0.0 }
 0xfdf   :  { %1536 = vadd.xlane.f32.xlu2 %v1535_v15 }
 0xfee   :  { %v1714_v57 = vpop.xlane.xlu0 %1713 }
 0xfef   :  { %v1716_v21 = vsub.f32 %v1706_v7, %v1714_v57 }
 0xff1   :  { %v1719_v22 = vmul.f32 1.442695, %v1716_v21 }
 0xff3   :  { %2183 = vpow2.f32 %v1719_v22 }
 0xff5   :  { %1759 = vrot.lane.b32.xlu1 %v2634_v52, %s2859_s3 }
 0xff7   :  { %1596 = vrot.lane.b32.xlu2 %v2659_v19, %s2213_s22 }
 0xff9   :  { %v2765_v23 = vpop.eup %2183 }
 0xffa   :  { %v1724_v24 = vsel %vm114_vm1, %v2765_v23, 0.0 }
 0xffb   :  { %1725 = vadd.xlane.f32.xlu0 %v1724_v24 }
0x100f   :  { %1785 = vrot.lane.b32.xlu0 %v2659_v19, %s2859_s3 }
0x104f   :  { %v1723_v41 = vpop.xlane.xlu1 %1722 }
0x1050   :  { %2185 = vrcp.f32 %v1723_v41  ;;  %v1738_v53 = vand.u32 2147483648, %v1723_v41  ;;  %v1736_v36 = vand.u32 2147483647, %v1723_v41  ;;  %vm1732_vm15 = vweird.f32 %v1723_v41 }
0x1052   :  { %v1537_v25 = vpop.xlane.xlu2 %1536  ;;  %v1739_v19 = vor.u32 1.1754944e-38, %v1738_v53  ;;  %vm1737_vm4 = vcmp.eq.f32.partialorder %v1736_v36, 8.507059e+37 }
0x1053   :  { %2187 = vrcp.f32 %v1537_v25  ;;  %v1564_v45 = vand.u32 2147483648, %v1537_v25  ;;  %v1562_v37 = vand.u32 2147483647, %v1537_v25  ;;  %vm1558_vm5 = vweird.f32 %v1537_v25 }
0x1055   :  { %v1565_v33 = vor.u32 1.1754944e-38, %v1564_v45  ;;  %vm1563_vm7 = vcmp.eq.f32.partialorder %v1562_v37, 8.507059e+37 }
0x1056   :  { %v2186_v26 = vpop.eup %2185 }
0x1057   :  { %v1728_v27 = vmul.f32 %v2186_v26, %v1723_v41  ;;  %vm1733_vm14 = vweird.f32 %v2186_v26 }
0x1058   :  { %vm1734_vm2 = vmor %vm1732_vm15, %vm1733_vm14 }
0x1059   :  { %v2188_v29 = vpop.eup %2187  ;;  %v1729_v52 = vsub.f32 1.0, %v1728_v27 }
0x105a   :  { %v1554_v30 = vmul.f32 %v2188_v29, %v1537_v25  ;;  %v1597_v8 = vpop.permute.xlu2 %1596  ;;  %vm1559_vm3 = vweird.f32 %v2188_v29  ;;  %v2201_v25 = vld [vmem:[%s2847_s4] ss:$0 sm:$0xff] }
0x105b   :  { %v1730_v31 = vmul.f32 %v2186_v26, %v1729_v52  ;;  %1617 = vmatpush.msra.mxu0 %v1597_v8  ;;  %vm1560_vm6 = vmor %vm1558_vm5, %vm1559_vm3 }
0x105c   :  { %v1555_v35 = vsub.f32 1.0, %v1554_v30 }
0x105d   :  { %v1731_v20 = vadd.f32 %v2186_v26, %v1730_v31 }
0x105e   :  { %v1556_v46 = vmul.f32 %v2188_v29, %v1555_v35 }
0x105f   :  { %v1735_v47 = vsel %vm1734_vm2, %v2186_v26, %v1731_v20 }
0x1060   :  { %v1740_v48 = vsel %vm1737_vm4, %v1739_v19, %v1735_v47  ;;  %v1557_v0 = vadd.f32 %v2188_v29, %v1556_v46 }
0x1061   :  { %v1741_v34 = vmul.f32 %v2180_v10, %v1740_v48 }
0x1062   :  { %v1561_v1 = vsel %vm1560_vm6, %v2188_v29, %v1557_v0 }
0x1063   :  { %v1566_v2 = vsel %vm1563_vm7, %v1565_v33, %v1561_v1  ;;  %v1757_v39 = vadd.f32 %v1741_v34, %v2745_v38 }
0x1064   :  { %v1567_v50 = vmul.f32 %v2182_v14, %v1566_v2  ;;  %v1429_v14 = vpop.f32.mrf.mxu3 }
0x1065   :  { %v1842_v51 = vmul.f32 0.25, %v1757_v39  ;;  %v1459_v21 = vadd.f32 %v2750_v49, %v1429_v14 }
0x1066   :  { %2080 = vmatmul.msk.f32.vlgmr.msra.gmra.mxu0 %vm114_vm1, %v1567_v50 }
0x1067   :  { %v1760_v55 = vpop.permute.xlu1 %1759  ;;  %2091 = vst.msk [vmem:[%s2846_s14 + $0x10] sm:$0xff] %vm114_vm1, %v1842_v51 }
0x1068   :  { %1780 = vmatpush.msrb.mxu0 %v1760_v55 }
0x106a   :  { %1917 = vmatpush.msra.mxu0 %v2511_v17 }
0x106c   :  { %1918 = vmatpush.msra.mxu0 %v2517_v6  ;;  %v1353_v6 = vadd.f32 %v2738_v40, %v2724_v63  ;;  %v1432_v15 = vpop.f32.mrf.mxu3 }
0x106d   :  { %v1462_v52 = vadd.f32 %v2752_v42, %v1432_v15 }
0x106e   :  { %1919 = vmatpush.msra.mxu0 %v2523_v12  ;;  %v1726_v28 = vpop.xlane.xlu0 %1725  ;;  %v1569_v5 = vadd.f32 %v1567_v50, %v1353_v6 }
0x106f   :  { %2087 = vmatmul.msk.f32.vlgmr.msrb.gmra.mxu0 %vm114_vm1, %v1741_v34  ;;  %2189 = vrcp.f32 %v1726_v28  ;;  %v1753_v7 = vand.u32 2147483648, %v1726_v28  ;;  %v1751_v4 = vand.u32 2147483647, %v1726_v28  ;;  %vm1747_vm9 = vweird.f32 %v1726_v28 }
0x1070   :  { %1920 = vmatpush.msra.mxu0 %v2528_v18 }
0x1071   :  { %v1754_v17 = vor.u32 1.1754944e-38, %v1753_v7  ;;  %vm1752_vm12 = vcmp.eq.f32.partialorder %v1751_v4, 8.507059e+37  ;;  %v2202_v7 = vld [vmem:[%s2848_s9] ss:$0 sm:$0xff] }
0x1072   :  { %v2203_v4 = vld [vmem:[%s2849_s10] ss:$0 sm:$0xff] }
0x1074   :  { %v1645_v57 = vpop.f32.mrf.mxu3 }
0x1075   :  { %v2190_v38 = vpop.eup %2189  ;;  %v1651_v22 = vadd.f32 %v1645_v57, %v1459_v21 }
0x1076   :  { %v1743_v56 = vmul.f32 %v2190_v38, %v1726_v28  ;;  %vm1748_vm8 = vweird.f32 %v2190_v38 }
0x1077   :  { %vm1749_vm11 = vmor %vm1747_vm9, %vm1748_vm8 }
0x1078   :  { %v1744_v58 = vsub.f32 1.0, %v1743_v56 }
0x107a   :  { %v1745_v60 = vmul.f32 %v2190_v38, %v1744_v58 }
0x107c   :  { %v1746_v16 = vadd.f32 %v2190_v38, %v1745_v60 }
0x107e   :  { %v1750_v12 = vsel %vm1749_vm11, %v2190_v38, %v1746_v16 }
0x107f   :  { %v1755_v62 = vsel %vm1752_vm12, %v1754_v17, %v1750_v12 }
0x1080   :  { %v1756_v18 = vmul.f32 %v2765_v23, %v1755_v62 }
0x1081   :  { %v1786_v54 = vpop.permute.xlu0 %1785 }
0x1082   :  { %1806 = vmatpush.msra.mxu1 %v1786_v54  ;;  %v1758_v9 = vadd.f32 %v1756_v18, %v1569_v5 }
0x1083   :  { %2088 = vmatmul.msk.f32.vlgmr.msra.gmra.mxu1 %vm114_vm1, %v1756_v18 }
0x1084   :  { %v1843_v10 = vmul.f32 0.25, %v1758_v9 }
0x1086   :  { %2092 = vst.msk [vmem:[%s2846_s14 + $0x18] sm:$0xff] %vm114_vm1, %v1843_v10 }
0x10e3   :  { %v1619_v13 = vpop.f32.mrf.mxu0 }
0x10e4   :  { %2082 = vmatmul.msk.f32.gmra.mxu3 %vm114_vm1, %v1619_v13 }
0x10ec   :  { %v1782_v63 = vpop.f32.mrf.mxu0 }
0x10ed   :  { %2089 = vmatmul.msk.f32.vlgmr.msra.gmra.mxu2 %vm114_vm1, %v1782_v63 }
0x1100   :  { %v1808_v40 = vpop.f32.mrf.mxu1 }
0x1101   :  { %2090 = vmatmul.msk.f32.gmra.mxu2 %vm114_vm1, %v1808_v40 }
0x1167   :  { %v1648_v29 = vpop.f32.mrf.mxu3 }
0x1168   :  { %v1652_v53 = vadd.f32 %v1648_v29, %v1462_v52 }
0x1170   :  { %v1834_v23 = vpop.f32.mrf.mxu2 }
0x1171   :  { %v1840_v24 = vadd.f32 %v1834_v23, %v1651_v22 }
0x1173   :  { %v1847_v41 = vadd.f32 %v1840_v24, %v2625_v44 }
0x1175   :  { %v1849_v26 = vadd.f32 %v2201_v25, %v1847_v41 }
0x1177   :  { %v1851_v27 = vsel %vm79_vm0, %v1849_v26, 0.0 }
0x1178   :  { %1852 = vadd.xlane.f32.xlu2 %v1851_v27 }
0x1184   :  { %v1837_v30 = vpop.f32.mrf.mxu2 }
0x1185   :  { %v1841_v8 = vadd.f32 %v1837_v30, %v1652_v53 }
0x1187   :  { %v1848_v49 = vadd.f32 %v1841_v8, %v2648_v11 }
0x1189   :  { %v1850_v31 = vadd.f32 %v2201_v25, %v1848_v49 }
0x118b   :  { %v1854_v36 = vsel %vm79_vm0, %v1850_v31, 0.0 }
0x118c   :  { %1855 = vadd.xlane.f32.xlu0 %v1854_v36 }
0x11eb   :  { %v1853_v44 = vpop.xlane.xlu2 %1852 }
0x11ec   :  { %v1857_v35 = vmul.f32 %v1853_v44, %v2501_v59 }
0x11ee   :  { %v1859_v20 = vsub.f32 %v1849_v26, %v1857_v35 }
0x11f0   :  { %v1861_v45 = vmul.f32 %v1859_v20, %v1859_v20 }
0x11f2   :  { %v1863_v19 = vsel %vm79_vm0, %v1861_v45, 0.0 }
0x11f3   :  { %1864 = vadd.xlane.f32.xlu1 %v1863_v19 }
0x11ff   :  { %v1856_v46 = vpop.xlane.xlu0 %1855 }
0x1200   :  { %v1858_v42 = vmul.f32 %v1856_v46, %v2501_v59 }
0x1202   :  { %v1860_v37 = vsub.f32 %v1850_v31, %v1858_v42 }
0x1204   :  { %v1862_v47 = vmul.f32 %v1860_v37, %v1860_v37 }
0x1206   :  { %v1866_v48 = vsel %vm79_vm0, %v1862_v47, 0.0 }
0x1207   :  { %1867 = vadd.xlane.f32.xlu2 %v1866_v48 }
0x1266   :  { %v1865_v11 = vpop.xlane.xlu1 %1864 }
0x1267   :  { %v1869_v0 = vmul.f32 %v1865_v11, %v2501_v59 }
0x1269   :  { %v1871_v33 = vadd.f32 1e-05, %v1869_v0 }
0x126b   :  { %2191 = vrsqrt.f32 %v1871_v33  ;;  %vm1879_vm13 = vweird.f32 %v1871_v33 }
0x1271   :  { %v2192_v34 = vpop.eup %2191 }
0x1272   :  { %v1874_v1 = vmul.f32 %v2192_v34, %v1871_v33  ;;  %vm1880_vm1 = vweird.f32 %v2192_v34 }
0x1273   :  { %vm1881_vm14 = vmor %vm1879_vm13, %vm1880_vm1 }
0x1274   :  { %v1875_v2 = vmul.f32 %v2192_v34, %v1874_v1 }
0x1276   :  { %v1876_v39 = vmul.f32 0.5, %v1875_v2 }
0x1278   :  { %v1877_v50 = vsub.f32 1.5, %v1876_v39 }
0x127a   :  { %v1878_v51 = vmul.f32 %v2192_v34, %v1877_v50  ;;  %v1868_v55 = vpop.xlane.xlu2 %1867 }
0x127b   :  { %v1870_v38 = vmul.f32 %v1868_v55, %v2501_v59 }
0x127c   :  { %v1882_v28 = vsel %vm1881_vm14, %v2192_v34, %v1878_v51 }
0x127d   :  { %v1893_v56 = vmul.f32 %v1882_v28, %v1859_v20  ;;  %v1872_v58 = vadd.f32 1e-05, %v1870_v38 }
0x127f   :  { %v1895_v60 = vmul.f32 %v2202_v7, %v1893_v56  ;;  %2193 = vrsqrt.f32 %v1872_v58  ;;  %vm1889_vm2 = vweird.f32 %v1872_v58 }
0x1281   :  { %v1897_v16 = vadd.f32 %v2203_v4, %v1895_v60 }
0x1283   :  { %2093 = vmatmul.msk.f32.vlgmr.msra.gmra.mxu0 %vm79_vm0, %v1897_v16 }
0x1285   :  { %v2194_v17 = vpop.eup %2193 }
0x1286   :  { %v1884_v6 = vmul.f32 %v2194_v17, %v1872_v58  ;;  %vm1890_vm15 = vweird.f32 %v2194_v17 }
0x1287   :  { %vm1891_vm3 = vmor %vm1889_vm2, %vm1890_vm15 }
0x1288   :  { %v1885_v12 = vmul.f32 %v2194_v17, %v1884_v6 }
0x128a   :  { %v1886_v62 = vmul.f32 0.5, %v1885_v12 }
0x128c   :  { %v1887_v5 = vsub.f32 1.5, %v1886_v62 }
0x128e   :  { %v1888_v18 = vmul.f32 %v2194_v17, %v1887_v5 }
0x1290   :  { %v1892_v54 = vsel %vm1891_vm3, %v2194_v17, %v1888_v18 }
0x1291   :  { %v1894_v9 = vmul.f32 %v1892_v54, %v1860_v37 }
0x1293   :  { %v1896_v10 = vmul.f32 %v2202_v7, %v1894_v9 }
0x1295   :  { %v1898_v13 = vadd.f32 %v2203_v4, %v1896_v10 }
0x1297   :  { %2094 = vmatmul.msk.f32.gmra.mxu0 %vm79_vm0, %v1898_v13 }
0x1300   :  { %v1922_v63 = vpop.f32.mrf.mxu0 }
0x1301   :  { %v1923_v40 = vadd.f32 %v2593_v43, %v1922_v63 }
0x1303   :  { %v1928_v14 = vmax.f32 %v1923_v40, 0.0 }
0x1305   :  { %2095 = vmatmul.msk.f32.vlgmr.msra.gmra.mxu3 %vm973_vm10, %v1928_v14 }
0x1314   :  { %v1925_v15 = vpop.f32.mrf.mxu0 }
0x1315   :  { %v1926_v57 = vadd.f32 %v2593_v43, %v1925_v15 }
0x1317   :  { %v1929_v21 = vmax.f32 %v1926_v57, 0.0 }
0x1319   :  { %2096 = vmatmul.msk.f32.gmra.mxu3 %vm973_vm10, %v1929_v21 }
0x1388   :  { %v1953_v22 = vpop.f32.mrf.mxu3 }
0x1389   :  { %v1954_v23 = vadd.f32 %v2602_v61, %v1953_v22 }
0x138b   :  { %v1959_v24 = vadd.f32 %v1954_v23, %v1897_v16 }
0x138d   :  { %v1961_v41 = vsel %vm79_vm0, %v1959_v24, 0.0 }
0x138e   :  { %1962 = vadd.xlane.f32.xlu0 %v1961_v41 }
0x139c   :  { %v1956_v25 = vpop.f32.mrf.mxu3 }
0x139d   :  { %v1957_v26 = vadd.f32 %v2602_v61, %v1956_v25 }
0x139f   :  { %v1960_v27 = vadd.f32 %v1957_v26, %v1898_v13 }
0x13a1   :  { %v1964_v29 = vsel %vm79_vm0, %v1960_v27, 0.0 }
0x13a2   :  { %1965 = vadd.xlane.f32.xlu2 %v1964_v29 }
0x1401   :  { %v1963_v52 = vpop.xlane.xlu0 %1962 }
0x1402   :  { %v1967_v43 = vmul.f32 %v1963_v52, %v2501_v59 }
0x1404   :  { %v1969_v53 = vsub.f32 %v1959_v24, %v1967_v43 }
0x1406   :  { %v1971_v30 = vmul.f32 %v1969_v53, %v1969_v53 }
0x1408   :  { %v1973_v8 = vsel %vm79_vm0, %v1971_v30, 0.0 }
0x1409   :  { %1974 = vadd.xlane.f32.xlu1 %v1973_v8 }
0x1415   :  { %v1966_v49 = vpop.xlane.xlu2 %1965 }
0x1416   :  { %v1968_v31 = vmul.f32 %v1966_v49, %v2501_v59 }
0x1418   :  { %v1970_v36 = vsub.f32 %v1960_v27, %v1968_v31 }
0x141a   :  { %v1972_v44 = vmul.f32 %v1970_v36, %v1970_v36 }
0x141c   :  { %v1976_v35 = vsel %vm79_vm0, %v1972_v44, 0.0 }
0x141d   :  { %1977 = vadd.xlane.f32.xlu0 %v1976_v35 }
0x147c   :  { %v1975_v61 = vpop.xlane.xlu1 %1974 }
0x147d   :  { %v1979_v20 = vmul.f32 %v1975_v61, %v2501_v59 }
0x147f   :  { %v1981_v45 = vadd.f32 1e-05, %v1979_v20 }
0x1481   :  { %2195 = vrsqrt.f32 %v1981_v45  ;;  %vm1989_vm4 = vweird.f32 %v1981_v45 }
0x1487   :  { %v2196_v19 = vpop.eup %2195 }
0x1488   :  { %v1984_v46 = vmul.f32 %v2196_v19, %v1981_v45  ;;  %vm1990_vm10 = vweird.f32 %v2196_v19 }
0x1489   :  { %vm1991_vm5 = vmor %vm1989_vm4, %vm1990_vm10 }
0x148a   :  { %v1985_v42 = vmul.f32 %v2196_v19, %v1984_v46 }
0x148c   :  { %v1986_v37 = vmul.f32 0.5, %v1985_v42 }
0x148e   :  { %v1987_v47 = vsub.f32 1.5, %v1986_v37 }
0x1490   :  { %v1988_v48 = vmul.f32 %v2196_v19, %v1987_v47  ;;  %v1978_v11 = vpop.xlane.xlu0 %1977 }
0x1491   :  { %v1980_v33 = vmul.f32 %v1978_v11, %v2501_v59 }
0x1492   :  { %v1992_v0 = vsel %vm1991_vm5, %v2196_v19, %v1988_v48 }
0x1493   :  { %v2003_v34 = vmul.f32 %v1992_v0, %v1969_v53  ;;  %v1982_v1 = vadd.f32 1e-05, %v1980_v33 }
0x1495   :  { %v2005_v2 = vmul.f32 %v2616_v3, %v2003_v34  ;;  %2197 = vrsqrt.f32 %v1982_v1  ;;  %vm1999_vm7 = vweird.f32 %v1982_v1 }
0x1497   :  { %v2007_v39 = vadd.f32 %v2621_v32, %v2005_v2 }
0x1499   :  { %2009 = vst.msk [vmem:[%s2856_s13] sm:$0xff] %vm79_vm0, %v2007_v39 }
0x149b   :  { %v2198_v50 = vpop.eup %2197 }
0x149c   :  { %v1994_v51 = vmul.f32 %v2198_v50, %v1982_v1  ;;  %vm2000_vm6 = vweird.f32 %v2198_v50 }
0x149d   :  { %vm2001_vm8 = vmor %vm1999_vm7, %vm2000_vm6 }
0x149e   :  { %v1995_v55 = vmul.f32 %v2198_v50, %v1994_v51 }
0x14a0   :  { %v1996_v28 = vmul.f32 0.5, %v1995_v55 }
0x14a2   :  { %v1997_v38 = vsub.f32 1.5, %v1996_v28 }
0x14a4   :  { %v1998_v56 = vmul.f32 %v2198_v50, %v1997_v38 }
0x14a6   :  { %v2002_v59 = vsel %vm2001_vm8, %v2198_v50, %v1998_v56 }
0x14a7   :  { %v2004_v58 = vmul.f32 %v2002_v59, %v1970_v36 }
0x14a9   :  { %v2006_v7 = vmul.f32 %v2616_v3, %v2004_v58 }
0x14ab   :  { %v2008_v60 = vadd.f32 %v2621_v32, %v2006_v7 }
0x14ad   :  { %2010 = vst.msk [vmem:[%s2856_s13 + $0x8] sm:$0xff] %vm79_vm0, %v2008_v60 }

</bundles_post_ra>
